<compile_context>
chip_gen: v6e
topology: v6e:2x2x1
jax: 0.10.0
libtpu: 0.0.40
codegen_flags: <defaults>
</compile_context>

<pallas_src>
import functools

import jax
import jax.numpy as jnp
from jax.experimental import pallas as pl
from jax.experimental.pallas import tpu as pltpu


K_PAD = 896      # 784 padded up to a multiple of 128 (7 * 128)
N_OUT_PAD = 128  # 10 padded up to one full lane vreg


def _round_up(n, m):
    return (n + m - 1) // m * m


def mlp_kernel(x_ref, w1_ref, b1_ref, w2_ref, b2_ref, w3_ref, b3_ref, o_ref):
    # Layer 1: bf16 inputs, f32 accumulate on the MXU; bias + ReLU in f32 (VPU).
    h1 = jnp.dot(x_ref[...], w1_ref[...], preferred_element_type=jnp.float32)
    h1 = jnp.maximum(h1 + b1_ref[...], 0.0)
    # Layer 2
    h2 = jnp.dot(h1.astype(jnp.bfloat16), w2_ref[...],
                 preferred_element_type=jnp.float32)
    h2 = jnp.maximum(h2 + b2_ref[...], 0.0)
    # Layer 3 (logits, lane-padded to 128 -> unmasked vst epilogue)
    logits = jnp.dot(h2.astype(jnp.bfloat16), w3_ref[...],
                     preferred_element_type=jnp.float32)
    o_ref[...] = (logits + b3_ref[...]).astype(o_ref.dtype)


@functools.partial(jax.jit, static_argnames=())
def neural_network_forward(x_nchw, params):
    """x_nchw: (B, 1, 28, 28) float32. Returns logits (B, 10) float32."""
    w1, b1, w2, b2, w3, b3 = params
    B = x_nchw.shape[0]
    in_dim = 28 * 28
    h_dim = w1.shape[1]      # 512
    out_dim = w3.shape[1]    # 10

    # nn.Flatten: (B, 1, 28, 28) -> (B, 784), row-major like PyTorch.
    x = x_nchw.reshape(B, in_dim)

    # Batch tiling: 256 rows/step (matches the 256x256 MXU on v6e/v7x); for
    # tiny batches round up to a sublane multiple so the block stays legal.
    tile_m = min(256, _round_up(B, 8))
    b_pad = _round_up(B, tile_m)

    # ---- Wrapper-side padding / dtype prep (zero-padded => numerically exact)
    x_p = jnp.zeros((b_pad, K_PAD), jnp.bfloat16)
    x_p = x_p.at[:B, :in_dim].set(x.astype(jnp.bfloat16))

    w1_p = jnp.zeros((K_PAD, h_dim), jnp.bfloat16).at[:in_dim, :].set(
        w1.astype(jnp.bfloat16))
    w2_p = w2.astype(jnp.bfloat16)
    w3_p = jnp.zeros((h_dim, N_OUT_PAD), jnp.bfloat16).at[:, :out_dim].set(
        w3.astype(jnp.bfloat16))

    b1_p = b1.astype(jnp.float32)                                    # (1, 512)
    b2_p = b2.astype(jnp.float32)                                    # (1, 512)
    b3_p = jnp.zeros((1, N_OUT_PAD), jnp.float32).at[:, :out_dim].set(
        b3.astype(jnp.float32))                                      # (1, 128)

    grid = (b_pad // tile_m,)

    # Constant index_map -> DMA'd once, VMEM-resident across all grid steps.
    resident = lambda shape: pl.BlockSpec(shape, lambda i: (0, 0))

    out_padded = pl.pallas_call(
        mlp_kernel,
        out_shape=jax.ShapeDtypeStruct((b_pad, N_OUT_PAD), jnp.float32),
        grid_spec=pltpu.PrefetchScalarGridSpec(
            num_scalar_prefetch=0,
            grid=grid,
            in_specs=[
                pl.BlockSpec((tile_m, K_PAD), lambda i: (i, 0)),   # x tile
                resident((K_PAD, h_dim)),                          # w1
                resident((1, h_dim)),                              # b1
                resident((h_dim, h_dim)),                          # w2
                resident((1, h_dim)),                              # b2
                resident((h_dim, N_OUT_PAD)),                      # w3
                resident((1, N_OUT_PAD)),                          # b3
            ],
            out_specs=pl.BlockSpec((tile_m, N_OUT_PAD), lambda i: (i, 0)),
        ),
        compiler_params=pltpu.CompilerParams(
            dimension_semantics=("parallel",)),
    )(x_p, w1_p, b1_p, w2_p, b2_p, w3_p, b3_p)

    return out_padded[:B, :out_dim]


def init_params(key):
    """Deterministic init mimicking PyTorch nn.Linear default
    (uniform +/- 1/sqrt(fan_in)); weights stored as (in_features, out_features)."""
    dims = [(28 * 28, 512), (512, 512), (512, 10)]
    params = []
    for fan_in, fan_out in dims:
        kw, kb, key = jax.random.split(key, 3)
        bound = 1.0 / jnp.sqrt(fan_in)
        w = jax.random.uniform(kw, (fan_in, fan_out), jnp.float32, -bound, bound)
        b = jax.random.uniform(kb, (1, fan_out), jnp.float32, -bound, bound)
        params.extend([w, b])
    return tuple(params)


def reference_forward(x_nchw, params):
    """Pure-JAX reference with identical bf16-input / f32-accumulate numerics."""
    w1, b1, w2, b2, w3, b3 = params
    x = x_nchw.reshape(x_nchw.shape[0], -1).astype(jnp.bfloat16)
    h1 = jnp.dot(x, w1.astype(jnp.bfloat16),
                 preferred_element_type=jnp.float32) + b1
    h1 = jnp.maximum(h1, 0.0)
    h2 = jnp.dot(h1.astype(jnp.bfloat16), w2.astype(jnp.bfloat16),
                 preferred_element_type=jnp.float32) + b2
    h2 = jnp.maximum(h2, 0.0)
    return jnp.dot(h2.astype(jnp.bfloat16), w3.astype(jnp.bfloat16),
                   preferred_element_type=jnp.float32) + b3


if __name__ == "__main__":
    key = jax.random.PRNGKey(0)
    kx, kp = jax.random.split(key)

    B = 8
    x = jax.random.normal(kx, (B, 1, 28, 28), jnp.float32)  # NCHW like PyTorch
    params = init_params(kp)

    logits = neural_network_forward(x, params)
    logits = jax.block_until_ready(logits)

    ref = reference_forward(x, params)
    assert logits.shape == (B, 10)
    assert jnp.allclose(logits, ref, atol=1e-2, rtol=1e-2)

    print("KERNEL_OK")
</pallas_src>

<mosaic_0001>
module attributes {stable_mosaic.version = 11 : i64} {
  func.func @mlp_kernel(%arg0: i32, %arg1: memref<8x896xbf16, #tpu.memory_space<vmem>>, %arg2: memref<896x512xbf16, #tpu.memory_space<vmem>>, %arg3: memref<1x512xf32, #tpu.memory_space<vmem>>, %arg4: memref<512x512xbf16, #tpu.memory_space<vmem>>, %arg5: memref<1x512xf32, #tpu.memory_space<vmem>>, %arg6: memref<512x128xbf16, #tpu.memory_space<vmem>>, %arg7: memref<1x128xf32, #tpu.memory_space<vmem>>, %arg8: memref<8x128xf32, #tpu.memory_space<vmem>>) attributes {dimension_semantics = [#tpu.dimension_semantics<parallel>], iteration_bounds = array<i64: 1>, scalar_prefetch = 0 : i64, scratch_operands = 0 : i64, tpu.core_type = #tpu.core_type<tc>, window_params = [{transform_indices = @transform_0, window_bounds = array<i64: 8, 896>}, {pipeline_mode = #tpu.pipeline_mode<synchronous>, transform_indices = @transform_1, window_bounds = array<i64: 896, 512>}, {pipeline_mode = #tpu.pipeline_mode<synchronous>, transform_indices = @transform_2, window_bounds = array<i64: 1, 512>}, {pipeline_mode = #tpu.pipeline_mode<synchronous>, transform_indices = @transform_3, window_bounds = array<i64: 512, 512>}, {pipeline_mode = #tpu.pipeline_mode<synchronous>, transform_indices = @transform_4, window_bounds = array<i64: 1, 512>}, {pipeline_mode = #tpu.pipeline_mode<synchronous>, transform_indices = @transform_5, window_bounds = array<i64: 512, 128>}, {pipeline_mode = #tpu.pipeline_mode<synchronous>, transform_indices = @transform_6, window_bounds = array<i64: 1, 128>}, {transform_indices = @transform_7, window_bounds = array<i64: 8, 128>}]} {
    %c0 = arith.constant 0 : index
    %c0_0 = arith.constant 0 : index
    %0 = vector.load %arg1[%c0, %c0_0] : memref<8x896xbf16, #tpu.memory_space<vmem>>, vector<8x896xbf16>
    %c0_1 = arith.constant 0 : index
    %c0_2 = arith.constant 0 : index
    %1 = vector.load %arg2[%c0_1, %c0_2] : memref<896x512xbf16, #tpu.memory_space<vmem>>, vector<896x512xbf16>
    %cst = arith.constant dense<0.000000e+00> : vector<8x512xf32>
    %2 = tpu.matmul %0, %1, %cst {dimension_numbers = #tpu.dot_dimension_numbers<[1], [0], [0], [1], [0, 0, 1, 1], [], []>} : vector<8x896xbf16>, vector<896x512xbf16>, vector<8x512xf32> -> vector<8x512xf32>
    %c0_3 = arith.constant 0 : index
    %c0_4 = arith.constant 0 : index
    %3 = vector.load %arg3[%c0_3, %c0_4] : memref<1x512xf32, #tpu.memory_space<vmem>>, vector<1x512xf32>
    %4 = vector.broadcast %3 : vector<1x512xf32> to vector<8x512xf32>
    %5 = arith.addf %2, %4 : vector<8x512xf32>
    %cst_5 = arith.constant 0.000000e+00 : f32
    %6 = vector.broadcast %cst_5 : f32 to vector<8x512xf32>
    %7 = arith.maximumf %5, %6 : vector<8x512xf32>
    %8 = arith.truncf %7 : vector<8x512xf32> to vector<8x512xbf16>
    %c0_6 = arith.constant 0 : index
    %c0_7 = arith.constant 0 : index
    %9 = vector.load %arg4[%c0_6, %c0_7] : memref<512x512xbf16, #tpu.memory_space<vmem>>, vector<512x512xbf16>
    %cst_8 = arith.constant dense<0.000000e+00> : vector<8x512xf32>
    %10 = tpu.matmul %8, %9, %cst_8 {dimension_numbers = #tpu.dot_dimension_numbers<[1], [0], [0], [1], [0, 0, 1, 1], [], []>} : vector<8x512xbf16>, vector<512x512xbf16>, vector<8x512xf32> -> vector<8x512xf32>
    %c0_9 = arith.constant 0 : index
    %c0_10 = arith.constant 0 : index
    %11 = vector.load %arg5[%c0_9, %c0_10] : memref<1x512xf32, #tpu.memory_space<vmem>>, vector<1x512xf32>
    %12 = vector.broadcast %11 : vector<1x512xf32> to vector<8x512xf32>
    %13 = arith.addf %10, %12 : vector<8x512xf32>
    %cst_11 = arith.constant 0.000000e+00 : f32
    %14 = vector.broadcast %cst_11 : f32 to vector<8x512xf32>
    %15 = arith.maximumf %13, %14 : vector<8x512xf32>
    %16 = arith.truncf %15 : vector<8x512xf32> to vector<8x512xbf16>
    %c0_12 = arith.constant 0 : index
    %c0_13 = arith.constant 0 : index
    %17 = vector.load %arg6[%c0_12, %c0_13] : memref<512x128xbf16, #tpu.memory_space<vmem>>, vector<512x128xbf16>
    %cst_14 = arith.constant dense<0.000000e+00> : vector<8x128xf32>
    %18 = tpu.matmul %16, %17, %cst_14 {dimension_numbers = #tpu.dot_dimension_numbers<[1], [0], [0], [1], [0, 0, 1, 1], [], []>} : vector<8x512xbf16>, vector<512x128xbf16>, vector<8x128xf32> -> vector<8x128xf32>
    %c0_15 = arith.constant 0 : index
    %c0_16 = arith.constant 0 : index
    %19 = vector.load %arg7[%c0_15, %c0_16] : memref<1x128xf32, #tpu.memory_space<vmem>>, vector<1x128xf32>
    %20 = vector.broadcast %19 : vector<1x128xf32> to vector<8x128xf32>
    %21 = arith.addf %18, %20 : vector<8x128xf32>
    %c0_17 = arith.constant 0 : index
    %c0_18 = arith.constant 0 : index
    %22 = vector.load %arg8[%c0_17, %c0_18] : memref<8x128xf32, #tpu.memory_space<vmem>>, vector<8x128xf32>
    tpu.vector_store %arg8[%c0_17, %c0_18], %21 {strides = array<i32>} : memref<8x128xf32, #tpu.memory_space<vmem>>, vector<8x128xf32>,
    return
  }
  func.func @transform_0(%arg0: i32) -> (i32, i32) {
    %c0_i32 = arith.constant 0 : i32
    %c0_i32_0 = arith.constant 0 : i32
    return %arg0, %c0_i32 : i32, i32
  }
  func.func @transform_1(%arg0: i32) -> (i32, i32) {
    %c0_i32 = arith.constant 0 : i32
    %c0_i32_0 = arith.constant 0 : i32
    %c0_i32_1 = arith.constant 0 : i32
    return %c0_i32, %c0_i32_0 : i32, i32
  }
  func.func @transform_2(%arg0: i32) -> (i32, i32) {
    %c0_i32 = arith.constant 0 : i32
    %c0_i32_0 = arith.constant 0 : i32
    %c0_i32_1 = arith.constant 0 : i32
    return %c0_i32, %c0_i32_0 : i32, i32
  }
  func.func @transform_3(%arg0: i32) -> (i32, i32) {
    %c0_i32 = arith.constant 0 : i32
    %c0_i32_0 = arith.constant 0 : i32
    %c0_i32_1 = arith.constant 0 : i32
    return %c0_i32, %c0_i32_0 : i32, i32
  }
  func.func @transform_4(%arg0: i32) -> (i32, i32) {
    %c0_i32 = arith.constant 0 : i32
    %c0_i32_0 = arith.constant 0 : i32
    %c0_i32_1 = arith.constant 0 : i32
    return %c0_i32, %c0_i32_0 : i32, i32
  }
  func.func @transform_5(%arg0: i32) -> (i32, i32) {
    %c0_i32 = arith.constant 0 : i32
    %c0_i32_0 = arith.constant 0 : i32
    %c0_i32_1 = arith.constant 0 : i32
    return %c0_i32, %c0_i32_0 : i32, i32
  }
  func.func @transform_6(%arg0: i32) -> (i32, i32) {
    %c0_i32 = arith.constant 0 : i32
    %c0_i32_0 = arith.constant 0 : i32
    %c0_i32_1 = arith.constant 0 : i32
    return %c0_i32, %c0_i32_0 : i32, i32
  }
  func.func @transform_7(%arg0: i32) -> (i32, i32) {
    %c0_i32 = arith.constant 0 : i32
    %c0_i32_0 = arith.constant 0 : i32
    return %arg0, %c0_i32 : i32, i32
  }
}

</mosaic_0001>

<bundles_post_ra>
// kernel: neural_network_forward.1
= control target key start
LH: loop header
LB: loop body
LE: loop exit
PB: predicated region body
PF: predicated region fallthrough
CT: control target
= control target key end

     0   :  { %s5408_s0 = inlined_call_operand.vmem [shape: bf16[8,896], index: 0, kind: input, shape index: {}]   ;;  %s5409_s1 = inlined_call_operand.vmem [shape: bf16[896,512], index: 1, kind: input, shape index: {}]   ;;  %s5410_s2 = inlined_call_operand.vmem [shape: f32[1,512], index: 2, kind: input, shape index: {}]   ;;  %s5411_s3 = inlined_call_operand.vmem [shape: bf16[512,512], index: 3, kind: input, shape index: {}]   ;;  %s5412_s4 = inlined_call_operand.vmem [shape: f32[1,512], index: 4, kind: input, shape index: {}]   ;;  %s5413_s5 = inlined_call_operand.vmem [shape: bf16[512,128], index: 5, kind: input, shape index: {}]   ;;  %s5414_s6 = inlined_call_operand.vmem [shape: f32[1,128], index: 6, kind: input, shape index: {}]   ;;  %s5415_s7 = inlined_call_operand.hbm [shape: f32[8,128], index: 7, kind: output, shape index: {}]  }
   0x1   :  { %v3517_v0 = vld [vmem:[%s5409_s1 + $0xe4] ss:$16 sps:$4 sm:$0xff]   ;;  %v3521_v2 = vld [vmem:[%s5409_s1 + $0xe0] ss:$16 sps:$4 sm:$0xff]   ;;  %v29_v48 = vld [vmem:[%s5408_s0 + $0x8] sm:$0xff] }
   0x2   :  { %v3519_v1 = vld [vmem:[%s5409_s1 + $0x2e4] ss:$16 sps:$4 sm:$0xff]   ;;  %1423 = vmatprep.subr.bf16.mxu0 %v3517_v0  ;;  %v3522_v3 = vld [vmem:[%s5409_s1 + $0x2e0] ss:$16 sps:$4 sm:$0xff]   ;;  %v4301_v51 = vcombine.high %v29_v48, %v29_v48 }
   0x3   :  { %1464 = vmatprep.subr.bf16.mxu1 %v3519_v1  ;;  %v3523_v4 = vld [vmem:[%s5409_s1 + $0xc4] ss:$16 sps:$4 sm:$0xff]   ;;  %1424 = vmatpush1.bf16.msra.mxu0 %v3521_v2  ;;  %v3527_v6 = vld [vmem:[%s5409_s1 + $0xc0] ss:$16 sps:$4 sm:$0xff]  }
   0x4   :  { %1465 = vmatpush1.bf16.msra.mxu1 %v3522_v3  ;;  %v3525_v5 = vld [vmem:[%s5409_s1 + $0x2c4] ss:$16 sps:$4 sm:$0xff]   ;;  %1425 = vmatprep.subr.bf16.mxu0 %v3523_v4  ;;  %v3528_v7 = vld [vmem:[%s5409_s1 + $0x2c0] ss:$16 sps:$4 sm:$0xff]  }
   0x5   :  { %1466 = vmatprep.subr.bf16.mxu1 %v3525_v5  ;;  %v3529_v8 = vld [vmem:[%s5409_s1 + $0xa4] ss:$16 sps:$4 sm:$0xff]   ;;  %v3533_v10 = vld [vmem:[%s5409_s1 + $0xa0] ss:$16 sps:$4 sm:$0xff]   ;;  %1496 = vmatprep.mubr.bf16.mxu1 %v4301_v51 }
   0x6   :  { %v3531_v9 = vld [vmem:[%s5409_s1 + $0x2a4] ss:$16 sps:$4 sm:$0xff]   ;;  %v3534_v11 = vld [vmem:[%s5409_s1 + $0x2a0] ss:$16 sps:$4 sm:$0xff]  }
   0x7   :  { %1426 = vmatpush1.bf16.msra.mxu0 %v3527_v6  ;;  %v3535_v12 = vld [vmem:[%s5409_s1 + $0x84] ss:$16 sps:$4 sm:$0xff]   ;;  %v3539_v14 = vld [vmem:[%s5409_s1 + $0x80] ss:$16 sps:$4 sm:$0xff]  }
   0x8   :  { %1467 = vmatpush1.bf16.msra.mxu1 %v3528_v7  ;;  %1427 = vmatprep.subr.bf16.mxu0 %v3529_v8  ;;  %v3537_v13 = vld [vmem:[%s5409_s1 + $0x284] ss:$16 sps:$4 sm:$0xff]   ;;  %v3540_v15 = vld [vmem:[%s5409_s1 + $0x280] ss:$16 sps:$4 sm:$0xff]   ;;  %v4361_v7 = vcombine.low %v29_v48, %v29_v48  ;;  %v3677_v48 = vld [vmem:[%s5409_s1 + $0xcc] ss:$16 sps:$4 sm:$0xff]  }
   0x9   :  { %1468 = vmatprep.subr.bf16.mxu1 %v3531_v9  ;;  %v3541_v16 = vld [vmem:[%s5409_s1 + $0x64] ss:$16 sps:$4 sm:$0xff]   ;;  %v3545_v18 = vld [vmem:[%s5409_s1 + $0x60] ss:$16 sps:$4 sm:$0xff]  }
   0xa   :  { %v3543_v17 = vld [vmem:[%s5409_s1 + $0x264] ss:$16 sps:$4 sm:$0xff]   ;;  %v3546_v19 = vld [vmem:[%s5409_s1 + $0x260] ss:$16 sps:$4 sm:$0xff]  }
   0xb   :  { %1428 = vmatpush1.bf16.msra.mxu0 %v3533_v10  ;;  %v3547_v20 = vld [vmem:[%s5409_s1 + $0x44] ss:$16 sps:$4 sm:$0xff]   ;;  %v3551_v22 = vld [vmem:[%s5409_s1 + $0x40] ss:$16 sps:$4 sm:$0xff]  }
   0xc   :  { %1469 = vmatpush1.bf16.msra.mxu1 %v3534_v11  ;;  %1429 = vmatprep.subr.bf16.mxu0 %v3535_v12  ;;  %v3549_v21 = vld [vmem:[%s5409_s1 + $0x244] ss:$16 sps:$4 sm:$0xff]   ;;  %v3552_v23 = vld [vmem:[%s5409_s1 + $0x240] ss:$16 sps:$4 sm:$0xff]  }
   0xd   :  { %1470 = vmatprep.subr.bf16.mxu1 %v3537_v13  ;;  %v3553_v24 = vld [vmem:[%s5409_s1 + $0x24] ss:$16 sps:$4 sm:$0xff]   ;;  %v3557_v26 = vld [vmem:[%s5409_s1 + $0x20] ss:$16 sps:$4 sm:$0xff]  }
   0xe   :  { %v3555_v25 = vld [vmem:[%s5409_s1 + $0x224] ss:$16 sps:$4 sm:$0xff]   ;;  %v3558_v27 = vld [vmem:[%s5409_s1 + $0x220] ss:$16 sps:$4 sm:$0xff]  }
   0xf   :  { %1430 = vmatpush1.bf16.msra.mxu0 %v3539_v14  ;;  %v3559_v28 = vld [vmem:[%s5409_s1 + $0x4] ss:$16 sps:$4 sm:$0xff]   ;;  %v3563_v30 = vld [vmem:[%s5409_s1] ss:$16 sps:$4 sm:$0xff]  }
  0x10   :  { %1471 = vmatpush1.bf16.msra.mxu1 %v3540_v15  ;;  %1431 = vmatprep.subr.bf16.mxu0 %v3541_v16  ;;  %v3561_v29 = vld [vmem:[%s5409_s1 + $0x204] ss:$16 sps:$4 sm:$0xff]   ;;  %v3564_v31 = vld [vmem:[%s5409_s1 + $0x200] ss:$16 sps:$4 sm:$0xff]   ;;  %v4107_v16 = vmov 0  }
  0x11   :  { %1472 = vmatprep.subr.bf16.mxu1 %v3543_v17  ;;  %v3565_v32 = vld [vmem:[%s5409_s1 + $0x1e4] ss:$16 sps:$4 sm:$0xff]   ;;  %v3569_v34 = vld [vmem:[%s5409_s1 + $0x1e0] ss:$16 sps:$4 sm:$0xff]  }
  0x12   :  { %v3567_v33 = vld [vmem:[%s5409_s1 + $0x3e4] ss:$16 sps:$4 sm:$0xff]   ;;  %v3570_v35 = vld [vmem:[%s5409_s1 + $0x3e0] ss:$16 sps:$4 sm:$0xff]  }
  0x13   :  { %1432 = vmatpush1.bf16.msra.mxu0 %v3545_v18  ;;  %v3571_v36 = vld [vmem:[%s5409_s1 + $0x1c4] ss:$16 sps:$4 sm:$0xff]   ;;  %v3575_v38 = vld [vmem:[%s5409_s1 + $0x1c0] ss:$16 sps:$4 sm:$0xff]  }
  0x14   :  { %1473 = vmatpush1.bf16.msra.mxu1 %v3546_v19  ;;  %1433 = vmatprep.subr.bf16.mxu0 %v3547_v20  ;;  %v3573_v37 = vld [vmem:[%s5409_s1 + $0x3c4] ss:$16 sps:$4 sm:$0xff]   ;;  %v3576_v39 = vld [vmem:[%s5409_s1 + $0x3c0] ss:$16 sps:$4 sm:$0xff]  }
  0x15   :  { %1474 = vmatprep.subr.bf16.mxu1 %v3549_v21  ;;  %v3577_v40 = vld [vmem:[%s5409_s1 + $0x1a4] ss:$16 sps:$4 sm:$0xff]   ;;  %v3581_v42 = vld [vmem:[%s5409_s1 + $0x1a0] ss:$16 sps:$4 sm:$0xff]  }
  0x16   :  { %v3579_v41 = vld [vmem:[%s5409_s1 + $0x3a4] ss:$16 sps:$4 sm:$0xff]   ;;  %v3582_v43 = vld [vmem:[%s5409_s1 + $0x3a0] ss:$16 sps:$4 sm:$0xff]  }
  0x17   :  { %1434 = vmatpush1.bf16.msra.mxu0 %v3551_v22  ;;  %v3583_v44 = vld [vmem:[%s5409_s1 + $0x184] ss:$16 sps:$4 sm:$0xff]   ;;  %v3587_v49 = vld [vmem:[%s5409_s1 + $0x180] ss:$16 sps:$4 sm:$0xff]  }
  0x18   :  { %1475 = vmatpush1.bf16.msra.mxu1 %v3552_v23  ;;  %1435 = vmatprep.subr.bf16.mxu0 %v3553_v24  ;;  %v3585_v45 = vld [vmem:[%s5409_s1 + $0x384] ss:$16 sps:$4 sm:$0xff]   ;;  %v3588_v50 = vld [vmem:[%s5409_s1 + $0x380] ss:$16 sps:$4 sm:$0xff]  }
  0x19   :  { %1476 = vmatprep.subr.bf16.mxu1 %v3555_v25  ;;  %v28_v46 = vld [vmem:[%s5408_s0] sm:$0xff] }
  0x1a   :  { %v4290_v47 = vcombine.high %v28_v46, %v28_v46  ;;  %v3589_v52 = vld [vmem:[%s5409_s1 + $0x164] ss:$16 sps:$4 sm:$0xff]   ;;  %v3593_v54 = vld [vmem:[%s5409_s1 + $0x160] ss:$16 sps:$4 sm:$0xff]   ;;  %v4359_v6 = vcombine.low %v28_v46, %v28_v46 }
  0x1b   :  { %1436 = vmatpush1.bf16.msra.mxu0 %v3557_v26  ;;  %v3591_v53 = vld [vmem:[%s5409_s1 + $0x364] ss:$16 sps:$4 sm:$0xff]   ;;  %v3594_v55 = vld [vmem:[%s5409_s1 + $0x360] ss:$16 sps:$4 sm:$0xff]  }
  0x1c   :  { %1477 = vmatpush1.bf16.msra.mxu1 %v3558_v27  ;;  %1437 = vmatprep.subr.bf16.mxu0 %v3559_v28  ;;  %v3595_v56 = vld [vmem:[%s5409_s1 + $0x144] ss:$16 sps:$4 sm:$0xff]   ;;  %v3599_v58 = vld [vmem:[%s5409_s1 + $0x140] ss:$16 sps:$4 sm:$0xff]  }
  0x1d   :  { %1478 = vmatprep.subr.bf16.mxu1 %v3561_v29  ;;  %1455 = vmatprep.mubr.bf16.mxu0 %v4290_v47  ;;  %v3597_v57 = vld [vmem:[%s5409_s1 + $0x344] ss:$16 sps:$4 sm:$0xff]   ;;  %v3600_v59 = vld [vmem:[%s5409_s1 + $0x340] ss:$16 sps:$4 sm:$0xff]  }
  0x1e   :  { %v3601_v60 = vld [vmem:[%s5409_s1 + $0x124] ss:$16 sps:$4 sm:$0xff]   ;;  %v3605_v62 = vld [vmem:[%s5409_s1 + $0x120] ss:$16 sps:$4 sm:$0xff]  }
  0x1f   :  { %1438 = vmatpush1.bf16.msra.mxu0 %v3563_v30  ;;  %v3603_v61 = vld [vmem:[%s5409_s1 + $0x324] ss:$16 sps:$4 sm:$0xff]   ;;  %v3606_v63 = vld [vmem:[%s5409_s1 + $0x320] ss:$16 sps:$4 sm:$0xff]  }
  0x20   :  { %1479 = vmatpush1.bf16.msra.mxu1 %v3564_v31  ;;  %1439 = vmatprep.subr.bf16.mxu0 %v3565_v32  ;;  %v3607_v0 = vld [vmem:[%s5409_s1 + $0x104] ss:$16 sps:$4 sm:$0xff]   ;;  %v3611_v2 = vld [vmem:[%s5409_s1 + $0x100] ss:$16 sps:$4 sm:$0xff]  }
  0x21   :  { %1480 = vmatprep.subr.bf16.mxu1 %v3567_v33  ;;  %v3609_v1 = vld [vmem:[%s5409_s1 + $0x304] ss:$16 sps:$4 sm:$0xff]   ;;  %v3612_v3 = vld [vmem:[%s5409_s1 + $0x300] ss:$16 sps:$4 sm:$0xff]  }
  0x22   :  { %v3619_v4 = vld [vmem:[%s5409_s1 + $0x4e4] ss:$16 sps:$4 sm:$0xff]   ;;  %v3617_v8 = vld [vmem:[%s5409_s1 + $0x4e0] ss:$16 sps:$4 sm:$0xff]  }
  0x23   :  { %1440 = vmatpush2.bf16.msra.mxu0 %v3569_v34  ;;  %v3622_v5 = vld [vmem:[%s5409_s1 + $0x6e4] ss:$16 sps:$4 sm:$0xff]   ;;  %v3620_v9 = vld [vmem:[%s5409_s1 + $0x6e0] ss:$16 sps:$4 sm:$0xff]  }
  0x24   :  { %1481 = vmatpush2.bf16.msra.mxu1 %v3570_v35  ;;  %1441 = vmatprep.subr.bf16.mxu0 %v3571_v36  ;;  %v3625_v10 = vld [vmem:[%s5409_s1 + $0x4c4] ss:$16 sps:$4 sm:$0xff]   ;;  %v3623_v12 = vld [vmem:[%s5409_s1 + $0x4c0] ss:$16 sps:$4 sm:$0xff]  }
  0x25   :  { %1482 = vmatprep.subr.bf16.mxu1 %v3573_v37  ;;  %v3628_v11 = vld [vmem:[%s5409_s1 + $0x6c4] ss:$16 sps:$4 sm:$0xff]   ;;  %v3626_v13 = vld [vmem:[%s5409_s1 + $0x6c0] ss:$16 sps:$4 sm:$0xff]  }
  0x26   :  { %v3631_v14 = vld [vmem:[%s5409_s1 + $0x4a4] ss:$16 sps:$4 sm:$0xff]   ;;  %v3629_v17 = vld [vmem:[%s5409_s1 + $0x4a0] ss:$16 sps:$4 sm:$0xff]  }
  0x27   :  { %1442 = vmatpush2.bf16.msra.mxu0 %v3575_v38  ;;  %v3634_v15 = vld [vmem:[%s5409_s1 + $0x6a4] ss:$16 sps:$4 sm:$0xff]   ;;  %v3632_v18 = vld [vmem:[%s5409_s1 + $0x6a0] ss:$16 sps:$4 sm:$0xff]  }
  0x28   :  { %1483 = vmatpush2.bf16.msra.mxu1 %v3576_v39  ;;  %1443 = vmatprep.subr.bf16.mxu0 %v3577_v40  ;;  %v3637_v19 = vld [vmem:[%s5409_s1 + $0x484] ss:$16 sps:$4 sm:$0xff]   ;;  %v3635_v21 = vld [vmem:[%s5409_s1 + $0x480] ss:$16 sps:$4 sm:$0xff]  }
  0x29   :  { %1484 = vmatprep.subr.bf16.mxu1 %v3579_v41  ;;  %v3640_v20 = vld [vmem:[%s5409_s1 + $0x684] ss:$16 sps:$4 sm:$0xff]   ;;  %v3638_v22 = vld [vmem:[%s5409_s1 + $0x680] ss:$16 sps:$4 sm:$0xff]  }
  0x2a   :  { %v3643_v23 = vld [vmem:[%s5409_s1 + $0x464] ss:$16 sps:$4 sm:$0xff]   ;;  %v3641_v25 = vld [vmem:[%s5409_s1 + $0x460] ss:$16 sps:$4 sm:$0xff]  }
  0x2b   :  { %1444 = vmatpush2.bf16.msra.mxu0 %v3581_v42  ;;  %v3646_v24 = vld [vmem:[%s5409_s1 + $0x664] ss:$16 sps:$4 sm:$0xff]   ;;  %v3644_v26 = vld [vmem:[%s5409_s1 + $0x660] ss:$16 sps:$4 sm:$0xff]   ;;  %v3671_v42 = vld [vmem:[%s5409_s1 + $0xec] ss:$16 sps:$4 sm:$0xff]  }
  0x2c   :  { %1485 = vmatpush2.bf16.msra.mxu1 %v3582_v43  ;;  %1445 = vmatprep.subr.bf16.mxu0 %v3583_v44  ;;  %v3649_v27 = vld [vmem:[%s5409_s1 + $0x444] ss:$16 sps:$4 sm:$0xff]   ;;  %v3647_v29 = vld [vmem:[%s5409_s1 + $0x440] ss:$16 sps:$4 sm:$0xff]   ;;  %v3668_v44 = vld [vmem:[%s5408_s0 + $0x18] ss:$0 sps:$4 sm:$0xff]  }
  0x2d   :  { %1486 = vmatprep.subr.bf16.mxu1 %v3585_v45  ;;  %v3652_v28 = vld [vmem:[%s5409_s1 + $0x644] ss:$16 sps:$4 sm:$0xff]   ;;  %v3650_v30 = vld [vmem:[%s5409_s1 + $0x640] ss:$16 sps:$4 sm:$0xff]   ;;  %v3669_v45 = vld [vmem:[%s5409_s1 + $0xe8] ss:$16 sps:$4 sm:$0xff]  }
  0x2e   :  { %v3655_v31 = vld [vmem:[%s5409_s1 + $0x424] ss:$16 sps:$4 sm:$0xff]   ;;  %v3653_v34 = vld [vmem:[%s5409_s1 + $0x420] ss:$16 sps:$4 sm:$0xff]  }
  0x2f   :  { %1446 = vmatpush2.bf16.msra.mxu0 %v3587_v49  ;;  %v3658_v32 = vld [vmem:[%s5409_s1 + $0x624] ss:$16 sps:$4 sm:$0xff]   ;;  %v3656_v36 = vld [vmem:[%s5409_s1 + $0x620] ss:$16 sps:$4 sm:$0xff]  }
  0x30   :  { %1487 = vmatpush2.bf16.msra.mxu1 %v3588_v50  ;;  %1447 = vmatprep.subr.bf16.mxu0 %v3589_v52  ;;  %v4441_v33 = vld [vmem:[%s5408_s0 + $0x10] sm:$0xff]  ;;  %v3675_v50 = vld [vmem:[%s5409_s1 + $0xc8] ss:$16 sps:$4 sm:$0xff]  }
  0x31   :  { %1488 = vmatprep.subr.bf16.mxu1 %v3591_v53  ;;  %v4448_v35 = vcombine.high %v4441_v33, %v4441_v33  ;;  %v3661_v37 = vld [vmem:[%s5409_s1 + $0x404] ss:$16 sps:$4 sm:$0xff]   ;;  %v3659_v39 = vld [vmem:[%s5409_s1 + $0x400] ss:$16 sps:$4 sm:$0xff]   ;;  %v3683_v53 = vld [vmem:[%s5409_s1 + $0xac] ss:$16 sps:$4 sm:$0xff]  }
  0x32   :  { %v3664_v38 = vld [vmem:[%s5409_s1 + $0x604] ss:$16 sps:$4 sm:$0xff]   ;;  %v3662_v40 = vld [vmem:[%s5409_s1 + $0x600] ss:$16 sps:$4 sm:$0xff]  }
  0x33   :  { %1448 = vmatpush2.bf16.msra.mxu0 %v3593_v54  ;;  %v3667_v41 = vld [vmem:[%s5409_s1 + $0x5e4] ss:$16 sps:$4 sm:$0xff]   ;;  %v3665_v43 = vld [vmem:[%s5409_s1 + $0x5e0] ss:$16 sps:$4 sm:$0xff]  }
  0x34   :  { %1489 = vmatpush2.bf16.msra.mxu1 %v3594_v55  ;;  %1449 = vmatprep.subr.bf16.mxu0 %v3595_v56  ;;  %v3674_v46 = vld [vmem:[%s5409_s1 + $0x5c4] ss:$16 sps:$4 sm:$0xff]   ;;  %v3672_v49 = vld [vmem:[%s5409_s1 + $0x5c0] ss:$16 sps:$4 sm:$0xff]   ;;  %v3681_v55 = vld [vmem:[%s5409_s1 + $0xa8] ss:$16 sps:$4 sm:$0xff]  }
  0x35   :  { %1490 = vmatprep.subr.bf16.mxu1 %v3597_v57  ;;  %v3680_v52 = vld [vmem:[%s5409_s1 + $0x5a4] ss:$16 sps:$4 sm:$0xff]   ;;  %v3678_v54 = vld [vmem:[%s5409_s1 + $0x5a0] ss:$16 sps:$4 sm:$0xff]  }
  0x36   :  { %v3686_v56 = vld [vmem:[%s5409_s1 + $0x584] ss:$16 sps:$4 sm:$0xff]   ;;  %v3684_v57 = vld [vmem:[%s5409_s1 + $0x580] ss:$16 sps:$4 sm:$0xff]  }
  0x37   :  { %1450 = vmatpush2.bf16.msra.mxu0 %v3599_v58  ;;  %v3687_v58 = vld [vmem:[%s5409_s1 + $0x88] ss:$16 sps:$4 sm:$0xff]  }
  0x38   :  { %1491 = vmatpush2.bf16.msra.mxu1 %v3600_v59  ;;  %1451 = vmatprep.subr.bf16.mxu0 %v3601_v60  ;;  %v3692_v59 = vld [vmem:[%s5409_s1 + $0x564] ss:$16 sps:$4 sm:$0xff]   ;;  %v3695_v60 = vld [vmem:[%s5409_s1 + $0x6c] ss:$16 sps:$4 sm:$0xff]  }
  0x39   :  { %1492 = vmatprep.subr.bf16.mxu1 %v3603_v61  ;;  %v3690_v61 = vld [vmem:[%s5409_s1 + $0x560] ss:$16 sps:$4 sm:$0xff]  }
  0x3b   :  { %1452 = vmatpush2.bf16.msra.mxu0 %v3605_v62  ;;  %v3693_v62 = vld [vmem:[%s5409_s1 + $0x68] ss:$16 sps:$4 sm:$0xff]  }
  0x3c   :  { %1493 = vmatpush2.bf16.msra.mxu1 %v3606_v63  ;;  %1453 = vmatprep.subr.bf16.mxu0 %v3607_v0  ;;  %v3698_v63 = vld [vmem:[%s5409_s1 + $0x544] ss:$16 sps:$4 sm:$0xff]   ;;  %v3701_v0 = vld [vmem:[%s5409_s1 + $0x4c] ss:$16 sps:$4 sm:$0xff]  }
  0x3d   :  { %1494 = vmatprep.subr.bf16.mxu1 %v3609_v1  ;;  %v3696_v1 = vld [vmem:[%s5409_s1 + $0x540] ss:$16 sps:$4 sm:$0xff]  }
  0x3f   :  { %1454 = vmatpush2.bf16.msra.mxu0 %v3611_v2  ;;  %v3699_v2 = vld [vmem:[%s5409_s1 + $0x48] ss:$16 sps:$4 sm:$0xff]  }
  0x40   :  { %1495 = vmatpush2.bf16.msra.mxu1 %v3612_v3  ;;  %1505 = vmatprep.subr.bf16.mxu0 %v3619_v4  ;;  %v3704_v3 = vld [vmem:[%s5409_s1 + $0x524] ss:$16 sps:$4 sm:$0xff]   ;;  %v3707_v4 = vld [vmem:[%s5409_s1 + $0x2c] ss:$16 sps:$4 sm:$0xff]  }
  0x41   :  { %1546 = vmatprep.subr.bf16.mxu1 %v3622_v5  ;;  %v3702_v5 = vld [vmem:[%s5409_s1 + $0x520] ss:$16 sps:$4 sm:$0xff]  }
  0x42   :  { %1456 = vmatmul.mubr.bf16.vlgmr.msra.gmra.mxu0 %v4359_v6 }
  0x43   :  { %1497 = vmatmul.mubr.bf16.vlgmr.msra.gmra.mxu1 %v4361_v7  ;;  %1506 = vmatpush1.bf16.msra.mxu0 %v3617_v8  ;;  %v3705_v8 = vld [vmem:[%s5409_s1 + $0x28] ss:$16 sps:$4 sm:$0xff]  }
  0x44   :  { %1547 = vmatpush1.bf16.msra.mxu1 %v3620_v9  ;;  %1507 = vmatprep.subr.bf16.mxu0 %v3625_v10  ;;  %v3710_v9 = vld [vmem:[%s5409_s1 + $0x504] ss:$16 sps:$4 sm:$0xff]   ;;  %v3713_v10 = vld [vmem:[%s5409_s1 + $0xc] ss:$16 sps:$4 sm:$0xff]  }
  0x45   :  { %1548 = vmatprep.subr.bf16.mxu1 %v3628_v11  ;;  %1578 = vmatprep.mubr.bf16.mxu1 %v4107_v16  ;;  %v3708_v11 = vld [vmem:[%s5409_s1 + $0x500] ss:$16 sps:$4 sm:$0xff]  }
  0x46   :  { %1537 = vmatprep.mubr.bf16.mxu0 %v4448_v35 }
  0x47   :  { %1508 = vmatpush1.bf16.msra.mxu0 %v3623_v12  ;;  %v3711_v12 = vld [vmem:[%s5409_s1 + $0x8] ss:$16 sps:$4 sm:$0xff]  }
  0x48   :  { %1549 = vmatpush1.bf16.msra.mxu1 %v3626_v13  ;;  %1509 = vmatprep.subr.bf16.mxu0 %v3631_v14  ;;  %v3718_v13 = vld [vmem:[%s5409_s1 + $0x1ec] ss:$16 sps:$4 sm:$0xff]  }
  0x49   :  { %1550 = vmatprep.subr.bf16.mxu1 %v3634_v15  ;;  %v3721_v14 = vld [vmem:[%s5409_s1 + $0x2ec] ss:$16 sps:$4 sm:$0xff]   ;;  %v4574_v15 = vcombine.low %v4441_v33, %v4441_v33  ;;  %v3743_v33 = vld [vmem:[%s5409_s1 + $0x268] ss:$16 sps:$4 sm:$0xff]  }
  0x4b   :  { %1510 = vmatpush1.bf16.msra.mxu0 %v3629_v17  ;;  %v3716_v17 = vld [vmem:[%s5409_s1 + $0x1e8] ss:$16 sps:$4 sm:$0xff]  }
  0x4c   :  { %1551 = vmatpush1.bf16.msra.mxu1 %v3632_v18  ;;  %1511 = vmatprep.subr.bf16.mxu0 %v3637_v19  ;;  %v3719_v18 = vld [vmem:[%s5409_s1 + $0x2e8] ss:$16 sps:$4 sm:$0xff]   ;;  %v3724_v19 = vld [vmem:[%s5409_s1 + $0x1cc] ss:$16 sps:$4 sm:$0xff]  }
  0x4d   :  { %1552 = vmatprep.subr.bf16.mxu1 %v3640_v20  ;;  %v3727_v20 = vld [vmem:[%s5409_s1 + $0x2cc] ss:$16 sps:$4 sm:$0xff]  }
  0x4f   :  { %1512 = vmatpush1.bf16.msra.mxu0 %v3635_v21  ;;  %v3722_v21 = vld [vmem:[%s5409_s1 + $0x1c8] ss:$16 sps:$4 sm:$0xff]  }
  0x50   :  { %1553 = vmatpush1.bf16.msra.mxu1 %v3638_v22  ;;  %1513 = vmatprep.subr.bf16.mxu0 %v3643_v23  ;;  %v3725_v22 = vld [vmem:[%s5409_s1 + $0x2c8] ss:$16 sps:$4 sm:$0xff]   ;;  %v3730_v23 = vld [vmem:[%s5409_s1 + $0x1ac] ss:$16 sps:$4 sm:$0xff]  }
  0x51   :  { %1554 = vmatprep.subr.bf16.mxu1 %v3646_v24  ;;  %v3733_v24 = vld [vmem:[%s5409_s1 + $0x2ac] ss:$16 sps:$4 sm:$0xff]  }
  0x53   :  { %1514 = vmatpush1.bf16.msra.mxu0 %v3641_v25  ;;  %v3728_v25 = vld [vmem:[%s5409_s1 + $0x1a8] ss:$16 sps:$4 sm:$0xff]  }
  0x54   :  { %1555 = vmatpush1.bf16.msra.mxu1 %v3644_v26  ;;  %1515 = vmatprep.subr.bf16.mxu0 %v3649_v27  ;;  %v3731_v26 = vld [vmem:[%s5409_s1 + $0x2a8] ss:$16 sps:$4 sm:$0xff]   ;;  %v3736_v27 = vld [vmem:[%s5409_s1 + $0x18c] ss:$16 sps:$4 sm:$0xff]  }
  0x55   :  { %1556 = vmatprep.subr.bf16.mxu1 %v3652_v28  ;;  %v3734_v28 = vld [vmem:[%s5409_s1 + $0x188] ss:$16 sps:$4 sm:$0xff]  }
  0x57   :  { %1516 = vmatpush1.bf16.msra.mxu0 %v3647_v29  ;;  %v3737_v29 = vld [vmem:[%s5409_s1 + $0x288] ss:$16 sps:$4 sm:$0xff]  }
  0x58   :  { %1557 = vmatpush1.bf16.msra.mxu1 %v3650_v30  ;;  %1517 = vmatprep.subr.bf16.mxu0 %v3655_v31  ;;  %v3742_v30 = vld [vmem:[%s5409_s1 + $0x16c] ss:$16 sps:$4 sm:$0xff]  }
  0x59   :  { %1558 = vmatprep.subr.bf16.mxu1 %v3658_v32  ;;  %v3745_v31 = vld [vmem:[%s5409_s1 + $0x26c] ss:$16 sps:$4 sm:$0xff]   ;;  %v3740_v32 = vld [vmem:[%s5409_s1 + $0x168] ss:$16 sps:$4 sm:$0xff]  }
  0x5b   :  { %1518 = vmatpush1.bf16.msra.mxu0 %v3653_v34  ;;  %v3748_v34 = vld [vmem:[%s5409_s1 + $0x14c] ss:$16 sps:$4 sm:$0xff]  }
  0x5c   :  { %1559 = vmatpush1.bf16.msra.mxu1 %v3656_v36  ;;  %1519 = vmatprep.subr.bf16.mxu0 %v3661_v37  ;;  %v3751_v36 = vld [vmem:[%s5409_s1 + $0x24c] ss:$16 sps:$4 sm:$0xff]   ;;  %v3746_v37 = vld [vmem:[%s5409_s1 + $0x148] ss:$16 sps:$4 sm:$0xff]  }
  0x5d   :  { %1560 = vmatprep.subr.bf16.mxu1 %v3664_v38  ;;  %v3749_v38 = vld [vmem:[%s5409_s1 + $0x248] ss:$16 sps:$4 sm:$0xff]  }
  0x5f   :  { %1520 = vmatpush1.bf16.msra.mxu0 %v3659_v39  ;;  %v3754_v39 = vld [vmem:[%s5409_s1 + $0x12c] ss:$16 sps:$4 sm:$0xff]  }
  0x60   :  { %1561 = vmatpush1.bf16.msra.mxu1 %v3662_v40  ;;  %1521 = vmatprep.subr.bf16.mxu0 %v3667_v41  ;;  %v3757_v40 = vld [vmem:[%s5409_s1 + $0x22c] ss:$16 sps:$4 sm:$0xff]   ;;  %v3752_v41 = vld [vmem:[%s5409_s1 + $0x128] ss:$16 sps:$4 sm:$0xff]  }
  0x61   :  { %1587 = vmatprep.subr.bf16.mxu1 %v3671_v42  ;;  %v3755_v42 = vld [vmem:[%s5409_s1 + $0x228] ss:$16 sps:$4 sm:$0xff]  }
  0x63   :  { %1579 = vmatmul.mubr.bf16.vlgmr.msra.gmra.mxu1 %v3668_v44  ;;  %1522 = vmatpush2.bf16.msra.mxu0 %v3665_v43  ;;  %v3760_v43 = vld [vmem:[%s5409_s1 + $0x10c] ss:$16 sps:$4 sm:$0xff]  }
  0x64   :  { %1588 = vmatpush1.bf16.msra.mxu1 %v3669_v45  ;;  %1523 = vmatprep.subr.bf16.mxu0 %v3674_v46  ;;  %v3763_v44 = vld [vmem:[%s5409_s1 + $0x20c] ss:$16 sps:$4 sm:$0xff]   ;;  %v3758_v45 = vld [vmem:[%s5409_s1 + $0x108] ss:$16 sps:$4 sm:$0xff]  }
  0x65   :  { %1589 = vmatprep.subr.bf16.mxu1 %v3677_v48  ;;  %1619 = vmatprep.mubr.bf16.mxu1 %v4290_v47  ;;  %v3689_v47 = vld [vmem:[%s5409_s1 + $0x8c] ss:$16 sps:$4 sm:$0xff]   ;;  %v3761_v46 = vld [vmem:[%s5409_s1 + $0x208] ss:$16 sps:$4 sm:$0xff]  }
  0x66   :  { %v3766_v48 = vld [vmem:[%s5409_s1 + $0x3ec] ss:$16 sps:$4 sm:$0xff]  }
  0x67   :  { %1524 = vmatpush2.bf16.msra.mxu0 %v3672_v49  ;;  %v3769_v49 = vld [vmem:[%s5409_s1 + $0x4ec] ss:$16 sps:$4 sm:$0xff]  }
  0x68   :  { %1590 = vmatpush1.bf16.msra.mxu1 %v3675_v50  ;;  %1525 = vmatprep.subr.bf16.mxu0 %v3680_v52  ;;  %v3764_v50 = vld [vmem:[%s5409_s1 + $0x3e8] ss:$16 sps:$4 sm:$0xff]  }
  0x69   :  { %1591 = vmatprep.subr.bf16.mxu1 %v3683_v53  ;;  %v3767_v52 = vld [vmem:[%s5409_s1 + $0x4e8] ss:$16 sps:$4 sm:$0xff]   ;;  %v3772_v53 = vld [vmem:[%s5409_s1 + $0x3cc] ss:$16 sps:$4 sm:$0xff]  }
  0x6b   :  { %1526 = vmatpush2.bf16.msra.mxu0 %v3678_v54  ;;  %v3775_v54 = vld [vmem:[%s5409_s1 + $0x4cc] ss:$16 sps:$4 sm:$0xff]  }
  0x6c   :  { %1592 = vmatpush1.bf16.msra.mxu1 %v3681_v55  ;;  %1527 = vmatprep.subr.bf16.mxu0 %v3686_v56  ;;  %v3770_v55 = vld [vmem:[%s5409_s1 + $0x3c8] ss:$16 sps:$4 sm:$0xff]  }
  0x6d   :  { %1593 = vmatprep.subr.bf16.mxu1 %v3689_v47  ;;  %v3773_v56 = vld [vmem:[%s5409_s1 + $0x4c8] ss:$16 sps:$4 sm:$0xff]   ;;  %v3778_v47 = vld [vmem:[%s5409_s1 + $0x3ac] ss:$16 sps:$4 sm:$0xff]  }
  0x6f   :  { %1528 = vmatpush2.bf16.msra.mxu0 %v3684_v57  ;;  %v3781_v57 = vld [vmem:[%s5409_s1 + $0x4ac] ss:$16 sps:$4 sm:$0xff]  }
  0x70   :  { %1594 = vmatpush1.bf16.msra.mxu1 %v3687_v58  ;;  %1529 = vmatprep.subr.bf16.mxu0 %v3692_v59  ;;  %v3776_v58 = vld [vmem:[%s5409_s1 + $0x3a8] ss:$16 sps:$4 sm:$0xff]   ;;  %v3784_v59 = vld [vmem:[%s5409_s1 + $0x38c] ss:$16 sps:$4 sm:$0xff]  }
  0x71   :  { %1595 = vmatprep.subr.bf16.mxu1 %v3695_v60  ;;  %v3787_v60 = vld [vmem:[%s5409_s1 + $0x48c] ss:$16 sps:$4 sm:$0xff]  }
  0x73   :  { %1530 = vmatpush2.bf16.msra.mxu0 %v3690_v61  ;;  %v3785_v61 = vld [vmem:[%s5409_s1 + $0x488] ss:$16 sps:$4 sm:$0xff]  }
  0x74   :  { %1596 = vmatpush1.bf16.msra.mxu1 %v3693_v62  ;;  %1531 = vmatprep.subr.bf16.mxu0 %v3698_v63  ;;  %v3790_v62 = vld [vmem:[%s5409_s1 + $0x36c] ss:$16 sps:$4 sm:$0xff]  }
  0x75   :  { %1597 = vmatprep.subr.bf16.mxu1 %v3701_v0  ;;  %v3793_v63 = vld [vmem:[%s5409_s1 + $0x46c] ss:$16 sps:$4 sm:$0xff]   ;;  %v3788_v0 = vld [vmem:[%s5409_s1 + $0x368] ss:$16 sps:$4 sm:$0xff]  }
  0x77   :  { %1532 = vmatpush2.bf16.msra.mxu0 %v3696_v1  ;;  %v3791_v1 = vld [vmem:[%s5409_s1 + $0x468] ss:$16 sps:$4 sm:$0xff]  }
  0x78   :  { %1598 = vmatpush1.bf16.msra.mxu1 %v3699_v2  ;;  %1533 = vmatprep.subr.bf16.mxu0 %v3704_v3  ;;  %v3796_v2 = vld [vmem:[%s5409_s1 + $0x34c] ss:$16 sps:$4 sm:$0xff]  }
  0x79   :  { %1599 = vmatprep.subr.bf16.mxu1 %v3707_v4  ;;  %v3799_v3 = vld [vmem:[%s5409_s1 + $0x44c] ss:$16 sps:$4 sm:$0xff]   ;;  %v3794_v4 = vld [vmem:[%s5409_s1 + $0x348] ss:$16 sps:$4 sm:$0xff]  }
  0x7b   :  { %1534 = vmatpush2.bf16.msra.mxu0 %v3702_v5  ;;  %v3797_v5 = vld [vmem:[%s5409_s1 + $0x448] ss:$16 sps:$4 sm:$0xff]  }
  0x7c   :  { %1600 = vmatpush1.bf16.msra.mxu1 %v3705_v8  ;;  %1535 = vmatprep.subr.bf16.mxu0 %v3710_v9  ;;  %v3802_v8 = vld [vmem:[%s5409_s1 + $0x32c] ss:$16 sps:$4 sm:$0xff]  }
  0x7d   :  { %1601 = vmatprep.subr.bf16.mxu1 %v3713_v10  ;;  %v3805_v9 = vld [vmem:[%s5409_s1 + $0x42c] ss:$16 sps:$4 sm:$0xff]   ;;  %v3800_v10 = vld [vmem:[%s5409_s1 + $0x328] ss:$16 sps:$4 sm:$0xff]  }
  0x7f   :  { %1536 = vmatpush2.bf16.msra.mxu0 %v3708_v11  ;;  %v3803_v11 = vld [vmem:[%s5409_s1 + $0x428] ss:$16 sps:$4 sm:$0xff]  }
  0x80   :  { %1602 = vmatpush1.bf16.msra.mxu1 %v3711_v12  ;;  %1628 = vmatprep.subr.bf16.mxu0 %v3721_v14  ;;  %v3808_v12 = vld [vmem:[%s5409_s1 + $0x30c] ss:$16 sps:$4 sm:$0xff]   ;;  %v3806_v14 = vld [vmem:[%s5409_s1 + $0x308] ss:$16 sps:$4 sm:$0xff]  }
  0x81   :  { %1603 = vmatprep.subr.bf16.mxu1 %v3718_v13  ;;  %v3811_v13 = vld [vmem:[%s5409_s1 + $0x40c] ss:$16 sps:$4 sm:$0xff]  }
  0x82   :  { %1538 = vmatmul.mubr.bf16.vlgmr.msra.gmra.mxu0 %v4574_v15 }
  0x83   :  { %1629 = vmatpush1.bf16.msra.mxu0 %v3719_v18  ;;  %1660 = vmatprep.mubr.bf16.mxu0 %v4301_v51  ;;  %v3739_v51 = vld [vmem:[%s5409_s1 + $0x28c] ss:$16 sps:$4 sm:$0xff]  }
  0x84   :  { %1604 = vmatpush2.bf16.msra.mxu1 %v3716_v17  ;;  %1630 = vmatprep.subr.bf16.mxu0 %v3727_v20  ;;  %v3809_v17 = vld [vmem:[%s5409_s1 + $0x408] ss:$16 sps:$4 sm:$0xff]   ;;  %v3814_v18 = vld [vmem:[%s5409_s1 + $0x5ec] ss:$16 sps:$4 sm:$0xff]  }
  0x85   :  { %1605 = vmatprep.subr.bf16.mxu1 %v3724_v19  ;;  %v3817_v19 = vld [vmem:[%s5409_s1 + $0x6ec] ss:$16 sps:$4 sm:$0xff]   ;;  %v3812_v20 = vld [vmem:[%s5409_s1 + $0x5e8] ss:$16 sps:$4 sm:$0xff]  }
  0x87   :  { %1631 = vmatpush1.bf16.msra.mxu0 %v3725_v22  ;;  %v3820_v22 = vld [vmem:[%s5409_s1 + $0x5cc] ss:$16 sps:$4 sm:$0xff]  }
  0x88   :  { %1606 = vmatpush2.bf16.msra.mxu1 %v3722_v21  ;;  %1632 = vmatprep.subr.bf16.mxu0 %v3733_v24  ;;  %v3815_v21 = vld [vmem:[%s5409_s1 + $0x6e8] ss:$16 sps:$4 sm:$0xff]  }
  0x89   :  { %1607 = vmatprep.subr.bf16.mxu1 %v3730_v23  ;;  %v3823_v23 = vld [vmem:[%s5409_s1 + $0x6cc] ss:$16 sps:$4 sm:$0xff]   ;;  %v3818_v24 = vld [vmem:[%s5409_s1 + $0x5c8] ss:$16 sps:$4 sm:$0xff]  }
  0x8b   :  { %1633 = vmatpush1.bf16.msra.mxu0 %v3731_v26  ;;  %v3826_v26 = vld [vmem:[%s5409_s1 + $0x5ac] ss:$16 sps:$4 sm:$0xff]  }
  0x8c   :  { %1608 = vmatpush2.bf16.msra.mxu1 %v3728_v25  ;;  %1634 = vmatprep.subr.bf16.mxu0 %v3739_v51  ;;  %v3821_v25 = vld [vmem:[%s5409_s1 + $0x6c8] ss:$16 sps:$4 sm:$0xff]  }
  0x8d   :  { %1609 = vmatprep.subr.bf16.mxu1 %v3736_v27  ;;  %v3829_v27 = vld [vmem:[%s5409_s1 + $0x6ac] ss:$16 sps:$4 sm:$0xff]   ;;  %v3824_v51 = vld [vmem:[%s5409_s1 + $0x5a8] ss:$16 sps:$4 sm:$0xff]  }
  0x8f   :  { %1635 = vmatpush1.bf16.msra.mxu0 %v3737_v29  ;;  %v3835_v29 = vld [vmem:[%s5409_s1 + $0x68c] ss:$16 sps:$4 sm:$0xff]  }
  0x90   :  { %1610 = vmatpush2.bf16.msra.mxu1 %v3734_v28  ;;  %1636 = vmatprep.subr.bf16.mxu0 %v3745_v31  ;;  %v3832_v28 = vld [vmem:[%s5409_s1 + $0x58c] ss:$16 sps:$4 sm:$0xff]  }
  0x91   :  { %1611 = vmatprep.subr.bf16.mxu1 %v3742_v30  ;;  %v3830_v30 = vld [vmem:[%s5409_s1 + $0x588] ss:$16 sps:$4 sm:$0xff]   ;;  %v3838_v31 = vld [vmem:[%s5409_s1 + $0x56c] ss:$16 sps:$4 sm:$0xff]  }
  0x93   :  { %1637 = vmatpush1.bf16.msra.mxu0 %v3743_v33  ;;  %v3836_v33 = vld [vmem:[%s5409_s1 + $0x568] ss:$16 sps:$4 sm:$0xff]  }
  0x94   :  { %1612 = vmatpush2.bf16.msra.mxu1 %v3740_v32  ;;  %1638 = vmatprep.subr.bf16.mxu0 %v3751_v36  ;;  %v3841_v32 = vld [vmem:[%s5409_s1 + $0x66c] ss:$16 sps:$4 sm:$0xff]  }
  0x95   :  { %1613 = vmatprep.subr.bf16.mxu1 %v3748_v34  ;;  %v3839_v34 = vld [vmem:[%s5409_s1 + $0x668] ss:$16 sps:$4 sm:$0xff]   ;;  %v3844_v36 = vld [vmem:[%s5409_s1 + $0x54c] ss:$16 sps:$4 sm:$0xff]  }
  0x97   :  { %1639 = vmatpush1.bf16.msra.mxu0 %v3749_v38  ;;  %v3842_v38 = vld [vmem:[%s5409_s1 + $0x548] ss:$16 sps:$4 sm:$0xff]  }
  0x98   :  { %1614 = vmatpush2.bf16.msra.mxu1 %v3746_v37  ;;  %1640 = vmatprep.subr.bf16.mxu0 %v3757_v40  ;;  %v3847_v37 = vld [vmem:[%s5409_s1 + $0x64c] ss:$16 sps:$4 sm:$0xff]  }
  0x99   :  { %1615 = vmatprep.subr.bf16.mxu1 %v3754_v39  ;;  %v3845_v39 = vld [vmem:[%s5409_s1 + $0x648] ss:$16 sps:$4 sm:$0xff]   ;;  %v3850_v40 = vld [vmem:[%s5409_s1 + $0x52c] ss:$16 sps:$4 sm:$0xff]  }
  0x9b   :  { %1641 = vmatpush1.bf16.msra.mxu0 %v3755_v42  ;;  %v3848_v42 = vld [vmem:[%s5409_s1 + $0x528] ss:$16 sps:$4 sm:$0xff]  }
  0x9c   :  { %1616 = vmatpush2.bf16.msra.mxu1 %v3752_v41  ;;  %1642 = vmatprep.subr.bf16.mxu0 %v3763_v44  ;;  %v3853_v41 = vld [vmem:[%s5409_s1 + $0x62c] ss:$16 sps:$4 sm:$0xff]  }
  0x9d   :  { %1617 = vmatprep.subr.bf16.mxu1 %v3760_v43  ;;  %v3851_v43 = vld [vmem:[%s5409_s1 + $0x628] ss:$16 sps:$4 sm:$0xff]   ;;  %v3856_v44 = vld [vmem:[%s5409_s1 + $0x50c] ss:$16 sps:$4 sm:$0xff]  }
  0x9f   :  { %1643 = vmatpush1.bf16.msra.mxu0 %v3761_v46  ;;  %v3854_v46 = vld [vmem:[%s5409_s1 + $0x508] ss:$16 sps:$4 sm:$0xff]  }
  0xa0   :  { %1618 = vmatpush2.bf16.msra.mxu1 %v3758_v45  ;;  %1644 = vmatprep.subr.bf16.mxu0 %v3766_v48  ;;  %v3859_v45 = vld [vmem:[%s5409_s1 + $0x60c] ss:$16 sps:$4 sm:$0xff]   ;;  %v3857_v48 = vld [vmem:[%s5409_s1 + $0x608] ss:$16 sps:$4 sm:$0xff]  }
  0xa1   :  { %1669 = vmatprep.subr.bf16.mxu1 %v3769_v49  ;;  %v3862_v49 = vld [vmem:[%s5411_s3 + $0xe4] ss:$16 sps:$4 sm:$0xff]  }
  0xa3   :  { %1620 = vmatmul.mubr.bf16.vlgmr.msra.gmra.mxu1 %v4359_v6  ;;  %1645 = vmatpush2.bf16.msra.mxu0 %v3764_v50  ;;  %v3779_v6 = vld [vmem:[%s5409_s1 + $0x4a8] ss:$16 sps:$4 sm:$0xff]   ;;  %v3860_v50 = vld [vmem:[%s5411_s3 + $0xe0] ss:$16 sps:$4 sm:$0xff]  }
  0xa4   :  { %1670 = vmatpush1.bf16.msra.mxu1 %v3767_v52  ;;  %1646 = vmatprep.subr.bf16.mxu0 %v3772_v53  ;;  %v3865_v52 = vld [vmem:[%s5411_s3 + $0xc4] ss:$16 sps:$4 sm:$0xff]   ;;  %v4084_v53 = vld [vmem:[%s5408_s0 + $0x18] ss:$0 sps:$4 sm:$0xff]  }
  0xa5   :  { %1671 = vmatprep.subr.bf16.mxu1 %v3775_v54  ;;  %1701 = vmatprep.mubr.bf16.mxu1 %v4448_v35  ;;  %v3782_v35 = vld [vmem:[%s5409_s1 + $0x388] ss:$16 sps:$4 sm:$0xff]   ;;  %v3863_v54 = vld [vmem:[%s5411_s3 + $0xc0] ss:$16 sps:$4 sm:$0xff]  }
  0xa7   :  { %1647 = vmatpush2.bf16.msra.mxu0 %v3770_v55  ;;  %v3868_v55 = vld [vmem:[%s5411_s3 + $0xa4] ss:$16 sps:$4 sm:$0xff]  }
  0xa8   :  { %1672 = vmatpush1.bf16.msra.mxu1 %v3773_v56  ;;  %1648 = vmatprep.subr.bf16.mxu0 %v3778_v47 }
  0xa9   :  { %1673 = vmatprep.subr.bf16.mxu1 %v3781_v57 }
  0xab   :  { %1649 = vmatpush2.bf16.msra.mxu0 %v3776_v58 }
  0xac   :  { %1674 = vmatpush1.bf16.msra.mxu1 %v3779_v6  ;;  %1650 = vmatprep.subr.bf16.mxu0 %v3784_v59 }
  0xad   :  { %1675 = vmatprep.subr.bf16.mxu1 %v3787_v60 }
  0xaf   :  { %1651 = vmatpush2.bf16.msra.mxu0 %v3782_v35 }
  0xb0   :  { %1676 = vmatpush1.bf16.msra.mxu1 %v3785_v61  ;;  %1652 = vmatprep.subr.bf16.mxu0 %v3790_v62 }
  0xb1   :  { %1677 = vmatprep.subr.bf16.mxu1 %v3793_v63 }
  0xb3   :  { %1653 = vmatpush2.bf16.msra.mxu0 %v3788_v0 }
  0xb4   :  { %1678 = vmatpush1.bf16.msra.mxu1 %v3791_v1  ;;  %1654 = vmatprep.subr.bf16.mxu0 %v3796_v2 }
  0xb5   :  { %1679 = vmatprep.subr.bf16.mxu1 %v3799_v3 }
  0xb7   :  { %1655 = vmatpush2.bf16.msra.mxu0 %v3794_v4 }
  0xb8   :  { %1680 = vmatpush1.bf16.msra.mxu1 %v3797_v5  ;;  %1656 = vmatprep.subr.bf16.mxu0 %v3802_v8 }
  0xb9   :  { %1681 = vmatprep.subr.bf16.mxu1 %v3805_v9 }
  0xbb   :  { %1657 = vmatpush2.bf16.msra.mxu0 %v3800_v10 }
  0xbc   :  { %1682 = vmatpush1.bf16.msra.mxu1 %v3803_v11  ;;  %1658 = vmatprep.subr.bf16.mxu0 %v3808_v12 }
  0xbd   :  { %1683 = vmatprep.subr.bf16.mxu1 %v3811_v13 }
  0xbf   :  { %1659 = vmatpush2.bf16.msra.mxu0 %v3806_v14 }
  0xc0   :  { %1684 = vmatpush1.bf16.msra.mxu1 %v3809_v17  ;;  %1710 = vmatprep.subr.bf16.mxu0 %v3817_v19 }
  0xc1   :  { %1685 = vmatprep.subr.bf16.mxu1 %v3814_v18 }
  0xc2   :  { %1661 = vmatmul.mubr.bf16.vlgmr.msra.gmra.mxu0 %v4361_v7  ;;  %v3827_v7 = vld [vmem:[%s5409_s1 + $0x6a8] ss:$16 sps:$4 sm:$0xff]  }
  0xc3   :  { %1711 = vmatpush1.bf16.msra.mxu0 %v3815_v21  ;;  %1742 = vmatprep.mubr.bf16.mxu0 %v4107_v16  ;;  %v3833_v16 = vld [vmem:[%s5409_s1 + $0x688] ss:$16 sps:$4 sm:$0xff]  }
  0xc4   :  { %1686 = vmatpush2.bf16.msra.mxu1 %v3812_v20  ;;  %1712 = vmatprep.subr.bf16.mxu0 %v3823_v23 }
  0xc5   :  { %1687 = vmatprep.subr.bf16.mxu1 %v3820_v22 }
  0xc7   :  { %1713 = vmatpush1.bf16.msra.mxu0 %v3821_v25 }
  0xc8   :  { %1688 = vmatpush2.bf16.msra.mxu1 %v3818_v24  ;;  %1714 = vmatprep.subr.bf16.mxu0 %v3829_v27 }
  0xc9   :  { %1689 = vmatprep.subr.bf16.mxu1 %v3826_v26 }
  0xcb   :  { %1715 = vmatpush1.bf16.msra.mxu0 %v3827_v7 }
  0xcc   :  { %1690 = vmatpush2.bf16.msra.mxu1 %v3824_v51  ;;  %1716 = vmatprep.subr.bf16.mxu0 %v3835_v29 }
  0xcd   :  { %1691 = vmatprep.subr.bf16.mxu1 %v3832_v28 }
  0xcf   :  { %1717 = vmatpush1.bf16.msra.mxu0 %v3833_v16 }
  0xd0   :  { %1692 = vmatpush2.bf16.msra.mxu1 %v3830_v30  ;;  %1718 = vmatprep.subr.bf16.mxu0 %v3841_v32 }
  0xd1   :  { %1693 = vmatprep.subr.bf16.mxu1 %v3838_v31 }
  0xd3   :  { %1719 = vmatpush1.bf16.msra.mxu0 %v3839_v34 }
  0xd4   :  { %1694 = vmatpush2.bf16.msra.mxu1 %v3836_v33  ;;  %1720 = vmatprep.subr.bf16.mxu0 %v3847_v37 }
  0xd5   :  { %1695 = vmatprep.subr.bf16.mxu1 %v3844_v36 }
  0xd7   :  { %1721 = vmatpush1.bf16.msra.mxu0 %v3845_v39 }
  0xd8   :  { %1696 = vmatpush2.bf16.msra.mxu1 %v3842_v38  ;;  %1722 = vmatprep.subr.bf16.mxu0 %v3853_v41 }
  0xd9   :  { %1697 = vmatprep.subr.bf16.mxu1 %v3850_v40 }
  0xdb   :  { %1723 = vmatpush1.bf16.msra.mxu0 %v3851_v43 }
  0xdc   :  { %1698 = vmatpush2.bf16.msra.mxu1 %v3848_v42  ;;  %1724 = vmatprep.subr.bf16.mxu0 %v3859_v45 }
  0xdd   :  { %1699 = vmatprep.subr.bf16.mxu1 %v3856_v44 }
  0xdf   :  { %1725 = vmatpush1.bf16.msra.mxu0 %v3857_v48 }
  0xe0   :  { %1700 = vmatpush2.bf16.msra.mxu1 %v3854_v46  ;;  %2549 = vmatprep.subr.bf16.mxu0 %v3862_v49 }
  0xe2   :  { %1743 = vmatmul.mubr.bf16.vlgmr.msra.gmra.mxu0 %v4084_v53 }
  0xe3   :  { %1702 = vmatmul.mubr.bf16.vlgmr.msra.gmra.mxu1 %v4574_v15  ;;  %2550 = vmatpush1.bf16.msra.mxu0 %v3860_v50 }
  0xe4   :  { %2551 = vmatprep.subr.bf16.mxu0 %v3865_v52 }
  0xe5   :  { %12 = vsyncpa [#allocation3], 0  ;;  %v3866_v15 = vld [vmem:[%s5411_s3 + $0xa0] ss:$16 sps:$4 sm:$0xff]   ;;  %v3871_v56 = vld [vmem:[%s5411_s3 + $0x84] ss:$16 sps:$4 sm:$0xff]  }
  0xe6   :  { %v3869_v47 = vld [vmem:[%s5411_s3 + $0x80] ss:$16 sps:$4 sm:$0xff]   ;;  %v3934_v58 = vld [vmem:[%s5411_s3 + $0x2e4] ss:$16 sps:$4 sm:$0xff]   ;;  %v3910_v53 = vld [vmem:[%s5411_s3 + $0xec] ss:$16 sps:$4 sm:$0xff]  }
  0xe7   :  { %2552 = vmatpush1.bf16.msra.mxu0 %v3863_v54  ;;  %v3932_v57 = vld [vmem:[%s5411_s3 + $0x2e0] ss:$16 sps:$4 sm:$0xff]   ;;  %v3874_v6 = vld [vmem:[%s5411_s3 + $0x64] ss:$16 sps:$4 sm:$0xff]   ;;  %2590 = vmatprep.subr.bf16.mxu1 %v3934_v58  ;;  %s4108_s11 = smov [#allocation2]  }
  0xe8   :  { %2553 = vmatprep.subr.bf16.mxu0 %v3868_v55  ;;  %2591 = vmatpush1.bf16.msra.mxu1 %v3932_v57  ;;  %v3872_v59 = vld [vmem:[%s5411_s3 + $0x60] ss:$16 sps:$4 sm:$0xff]   ;;  %v3940_v35 = vld [vmem:[%s5411_s3 + $0x2c4] ss:$16 sps:$4 sm:$0xff]   ;;  %s3071_s12 = sshll.u32 %s4108_s11, 4  ;;  %s3072_s12 = int_to_ptr.vmem [resolvable:$true] %s3071_s12 }
  0xe9   :  { %v3938_v60 = vld [vmem:[%s5411_s3 + $0x2c0] ss:$16 sps:$4 sm:$0xff]   ;;  %v3877_v61 = vld [vmem:[%s5411_s3 + $0x44] ss:$16 sps:$4 sm:$0xff]   ;;  %2592 = vmatprep.subr.bf16.mxu1 %v3940_v35  ;;  %v4006_v35 = vld [vmem:[%s5411_s3 + $0x2ec] ss:$16 sps:$4 sm:$0xff]   ;;  %p4090_p1 = scmp.lt.s32.totalorder %s3072_s12, %s3072_s12 }
  0xea   :  { %v3875_v62 = vld [vmem:[%s5411_s3 + $0x40] ss:$16 sps:$4 sm:$0xff]   ;;  %v3946_v0 = vld [vmem:[%s5411_s3 + $0x2a4] ss:$16 sps:$4 sm:$0xff]   ;;  %s4085_s13 = scalar_lea.vmem %s3072_s12, 128 }
  0xeb   :  { %2554 = vmatpush1.bf16.msra.mxu0 %v3866_v15  ;;  %v3944_v63 = vld [vmem:[%s5411_s3 + $0x2a0] ss:$16 sps:$4 sm:$0xff]   ;;  %v3880_v1 = vld [vmem:[%s5411_s3 + $0x24] ss:$16 sps:$4 sm:$0xff]   ;;  %p4086_p0 = scmp.ne.s32.totalorder %s3072_s12, %s4085_s13  ;;  %p4091_p2 = scmp.lt.s32.totalorder %s4085_s13, %s4085_s13 }
  0xec   :  { %2555 = vmatprep.subr.bf16.mxu0 %v3871_v56  ;;  %2593 = vmatpush1.bf16.msra.mxu1 %v3938_v60  ;;  %v3878_v2 = vld [vmem:[%s5411_s3 + $0x20] ss:$16 sps:$4 sm:$0xff]   ;;  %v3952_v4 = vld [vmem:[%s5411_s3 + $0x284] ss:$16 sps:$4 sm:$0xff]  }
  0xed   :  { %2594 = vmatprep.subr.bf16.mxu1 %v3946_v0  ;;  %v3950_v3 = vld [vmem:[%s5411_s3 + $0x280] ss:$16 sps:$4 sm:$0xff]   ;;  %v3883_v5 = vld [vmem:[%s5411_s3 + $0x4] ss:$16 sps:$4 sm:$0xff]   ;;  %p4092_p3 = por %p4091_p2, %p4090_p1 }
  0xee   :  { %v3881_v8 = vld [vmem:[%s5411_s3] ss:$16 sps:$4 sm:$0xff]   ;;  %v3958_v10 = vld [vmem:[%s5411_s3 + $0x264] ss:$16 sps:$4 sm:$0xff]  }
  0xef   :  { %2556 = vmatpush1.bf16.msra.mxu0 %v3869_v47  ;;  %v3956_v9 = vld [vmem:[%s5411_s3 + $0x260] ss:$16 sps:$4 sm:$0xff]   ;;  %v3886_v11 = vld [vmem:[%s5411_s3 + $0x1e4] ss:$16 sps:$4 sm:$0xff]   ;;  %p4093_p4 = pnand %p4092_p3, %p4086_p0 }
  0xf0   :  { %2557 = vmatprep.subr.bf16.mxu0 %v3874_v6  ;;  %2595 = vmatpush1.bf16.msra.mxu1 %v3944_v63  ;;  %v3884_v12 = vld [vmem:[%s5411_s3 + $0x1e0] ss:$16 sps:$4 sm:$0xff]   ;;  %v3964_v14 = vld [vmem:[%s5411_s3 + $0x244] ss:$16 sps:$4 sm:$0xff]  }
  0xf1   :  { %2596 = vmatprep.subr.bf16.mxu1 %v3952_v4  ;;  %v3962_v13 = vld [vmem:[%s5411_s3 + $0x240] ss:$16 sps:$4 sm:$0xff]   ;;  %v3889_v17 = vld [vmem:[%s5411_s3 + $0x1c4] ss:$16 sps:$4 sm:$0xff]  }
  0xf2   :  { %v3887_v20 = vld [vmem:[%s5411_s3 + $0x1c0] ss:$16 sps:$4 sm:$0xff]   ;;  %v3892_v23 = vld [vmem:[%s5411_s3 + $0x1a4] ss:$16 sps:$4 sm:$0xff]  }
  0xf3   :  { %2558 = vmatpush1.bf16.msra.mxu0 %v3872_v59  ;;  %v3970_v24 = vld [vmem:[%s5411_s3 + $0x224] ss:$16 sps:$4 sm:$0xff]   ;;  %v3968_v25 = vld [vmem:[%s5411_s3 + $0x220] ss:$16 sps:$4 sm:$0xff]  }
  0xf4   :  { %2559 = vmatprep.subr.bf16.mxu0 %v3877_v61  ;;  %2597 = vmatpush1.bf16.msra.mxu1 %v3950_v3  ;;  %v3890_v51 = vld [vmem:[%s5411_s3 + $0x1a0] ss:$16 sps:$4 sm:$0xff]   ;;  %v3895_v29 = vld [vmem:[%s5411_s3 + $0x184] ss:$16 sps:$4 sm:$0xff]   ;;  %v258_v61 = vlaneseq }
  0xf5   :  { %2598 = vmatprep.subr.bf16.mxu1 %v3958_v10  ;;  %v3974_v30 = vld [vmem:[%s5411_s3 + $0x200] ss:$16 sps:$4 sm:$0xff]   ;;  %v3976_v16 = vld [vmem:[%s5411_s3 + $0x204] ss:$16 sps:$4 sm:$0xff]  }
  0xf6   :  { %v3893_v31 = vld [vmem:[%s5411_s3 + $0x180] ss:$16 sps:$4 sm:$0xff]   ;;  %v3982_v33 = vld [vmem:[%s5411_s3 + $0x3e4] ss:$16 sps:$4 sm:$0xff]  }
  0xf7   :  { %2560 = vmatpush1.bf16.msra.mxu0 %v3875_v62  ;;  %v3980_v32 = vld [vmem:[%s5411_s3 + $0x3e0] ss:$16 sps:$4 sm:$0xff]   ;;  %v3898_v34 = vld [vmem:[%s5411_s3 + $0x164] ss:$16 sps:$4 sm:$0xff]   ;;  %v5074_v62 = vshrl.u32 %v258_v61, 7 }
  0xf8   :  { %2561 = vmatprep.subr.bf16.mxu0 %v3880_v1  ;;  %2599 = vmatpush1.bf16.msra.mxu1 %v3956_v9  ;;  %v3985_v36 = vld [vmem:[%s5411_s3 + $0x3c4] ss:$16 sps:$4 sm:$0xff]   ;;  %v3896_v37 = vld [vmem:[%s5411_s3 + $0x160] ss:$16 sps:$4 sm:$0xff]  }
  0xf9   :  { %2600 = vmatprep.subr.bf16.mxu1 %v3964_v14  ;;  %v3983_v38 = vld [vmem:[%s5411_s3 + $0x3c0] ss:$16 sps:$4 sm:$0xff]   ;;  %v3901_v39 = vld [vmem:[%s5411_s3 + $0x144] ss:$16 sps:$4 sm:$0xff]   ;;  %v260_v63 = vsub.s32 0, %v5074_v62  ;;  %v264_v1 = vsub.s32 1, %v5074_v62 }
  0xfa   :  { %v3988_v40 = vld [vmem:[%s5411_s3 + $0x3a4] ss:$16 sps:$4 sm:$0xff]   ;;  %v3899_v41 = vld [vmem:[%s5411_s3 + $0x140] ss:$16 sps:$4 sm:$0xff]  }
  0xfb   :  { %2562 = vmatpush1.bf16.msra.mxu0 %v3878_v2  ;;  %v3986_v42 = vld [vmem:[%s5411_s3 + $0x3a0] ss:$16 sps:$4 sm:$0xff]   ;;  %v3904_v43 = vld [vmem:[%s5411_s3 + $0x124] ss:$16 sps:$4 sm:$0xff]  }
  0xfc   :  { %2563 = vmatprep.subr.bf16.mxu0 %v3883_v5  ;;  %2601 = vmatpush1.bf16.msra.mxu1 %v3962_v13  ;;  %v3991_v44 = vld [vmem:[%s5411_s3 + $0x384] ss:$16 sps:$4 sm:$0xff]   ;;  %v3902_v45 = vld [vmem:[%s5411_s3 + $0x120] ss:$16 sps:$4 sm:$0xff]  }
  0xfd   :  { %2602 = vmatprep.subr.bf16.mxu1 %v3970_v24  ;;  %v3989_v46 = vld [vmem:[%s5411_s3 + $0x380] ss:$16 sps:$4 sm:$0xff]   ;;  %v3907_v48 = vld [vmem:[%s5411_s3 + $0x104] ss:$16 sps:$4 sm:$0xff]  }
  0xfe   :  { %v3994_v49 = vld [vmem:[%s5411_s3 + $0x364] ss:$16 sps:$4 sm:$0xff]   ;;  %v3905_v50 = vld [vmem:[%s5411_s3 + $0x100] ss:$16 sps:$4 sm:$0xff]  }
  0xff   :  { %2564 = vmatpush1.bf16.msra.mxu0 %v3881_v8  ;;  %v3992_v52 = vld [vmem:[%s5411_s3 + $0x360] ss:$16 sps:$4 sm:$0xff]   ;;  %v3997_v54 = vld [vmem:[%s5411_s3 + $0x344] ss:$16 sps:$4 sm:$0xff]  }
 0x100   :  { %2565 = vmatprep.subr.bf16.mxu0 %v3886_v11  ;;  %2603 = vmatpush1.bf16.msra.mxu1 %v3968_v25  ;;  %v3995_v55 = vld [vmem:[%s5411_s3 + $0x340] ss:$16 sps:$4 sm:$0xff]   ;;  %v4000_v47 = vld [vmem:[%s5411_s3 + $0x324] ss:$16 sps:$4 sm:$0xff]  }
 0x101   :  { %2604 = vmatprep.subr.bf16.mxu1 %v3976_v16  ;;  %v3998_v57 = vld [vmem:[%s5411_s3 + $0x320] ss:$16 sps:$4 sm:$0xff]   ;;  %v4003_v59 = vld [vmem:[%s5411_s3 + $0x304] ss:$16 sps:$4 sm:$0xff]   ;;  %v3925_v16 = vld [vmem:[%s5411_s3 + $0x4c] ss:$16 sps:$4 sm:$0xff]  }
 0x102   :  { %v4961_v18 = vpop.f32.mrf.mxu0  ;;  %v4001_v60 = vld [vmem:[%s5411_s3 + $0x300] ss:$16 sps:$4 sm:$0xff]  }
 0x103   :  { %v4963_v19 = vpop.f32.mrf.mxu1  ;;  %2566 = vmatpush2.bf16.msra.mxu0 %v3884_v12  ;;  %v5080_v0 = vld [vmem:[%s5410_s2] sm:$0xf] }
 0x104   :  { %v4968_v21 = vpop.f32.mrf.mxu0  ;;  %2567 = vmatprep.subr.bf16.mxu0 %v3889_v17  ;;  %2605 = vmatpush1.bf16.msra.mxu1 %v3974_v30  ;;  %v261_v2 = vrot.slane %v5080_v0, %v260_v63  ;;  %v265_v3 = vrot.slane %v5080_v0, %v264_v1  ;;  %v3920_v30 = vld [vmem:[%s5411_s3 + $0x68] ss:$16 sps:$4 sm:$0xff]  }
 0x105   :  { %v4970_v22 = vpop.f32.mrf.mxu1  ;;  %2606 = vmatprep.subr.bf16.mxu1 %v3982_v33 }
 0x106   :  { %v1461_v26 = vpop.f32.mrf.mxu0  ;;  %v1458_v4 = vadd.f32 %v4961_v18, %v261_v2  ;;  %v1460_v5 = vadd.f32 %v4968_v21, %v265_v3  ;;  %v3908_v18 = vld [vmem:[%s5411_s3 + $0xe8] ss:$16 sps:$4 sm:$0xff]  }
 0x107   :  { %v1502_v27 = vpop.f32.mrf.mxu1  ;;  %2568 = vmatpush2.bf16.msra.mxu0 %v3887_v20 }
 0x108   :  { %v1462_v7 = vpop.f32.mrf.mxu0  ;;  %2569 = vmatprep.subr.bf16.mxu0 %v3892_v23  ;;  %2607 = vmatpush2.bf16.msra.mxu1 %v3980_v32  ;;  %v1499_v8 = vadd.f32 %v4963_v19, %v1458_v4  ;;  %v1501_v10 = vadd.f32 %v4970_v22, %v1460_v5  ;;  %v3913_v19 = vld [vmem:[%s5411_s3 + $0xcc] ss:$16 sps:$4 sm:$0xff]   ;;  %v3911_v22 = vld [vmem:[%s5411_s3 + $0xc8] ss:$16 sps:$4 sm:$0xff]  }
 0x109   :  { %v1503_v28 = vpop.f32.mrf.mxu1  ;;  %2608 = vmatprep.subr.bf16.mxu1 %v3985_v36  ;;  %v3916_v27 = vld [vmem:[%s5411_s3 + $0xac] ss:$16 sps:$4 sm:$0xff]  }
 0x10a   :  { %v3919_v7 = vld [vmem:[%s5411_s3 + $0x8c] ss:$16 sps:$4 sm:$0xff]   ;;  %v3917_v28 = vld [vmem:[%s5411_s3 + $0x88] ss:$16 sps:$4 sm:$0xff]  }
 0x10b   :  { %2570 = vmatpush2.bf16.msra.mxu0 %v3890_v51  ;;  %v3914_v51 = vld [vmem:[%s5411_s3 + $0xa8] ss:$16 sps:$4 sm:$0xff]   ;;  %v3928_v32 = vld [vmem:[%s5411_s3 + $0x2c] ss:$16 sps:$4 sm:$0xff]  }
 0x10c   :  { %2571 = vmatprep.subr.bf16.mxu0 %v3895_v29  ;;  %2609 = vmatpush2.bf16.msra.mxu1 %v3983_v38  ;;  %v3922_v29 = vld [vmem:[%s5411_s3 + $0x6c] ss:$16 sps:$4 sm:$0xff]  }
 0x10d   :  { %2610 = vmatprep.subr.bf16.mxu1 %v3988_v40 }
 0x10f   :  { %2572 = vmatpush2.bf16.msra.mxu0 %v3893_v31  ;;  %v3923_v31 = vld [vmem:[%s5411_s3 + $0x48] ss:$16 sps:$4 sm:$0xff]  }
 0x110   :  { %2573 = vmatprep.subr.bf16.mxu0 %v3898_v34  ;;  %2611 = vmatpush2.bf16.msra.mxu1 %v3986_v42  ;;  %v3926_v34 = vld [vmem:[%s5411_s3 + $0x28] ss:$16 sps:$4 sm:$0xff]  }
 0x111   :  { %2612 = vmatprep.subr.bf16.mxu1 %v3991_v44  ;;  %v3935_v42 = vld [vmem:[%s5411_s3 + $0x1e8] ss:$16 sps:$4 sm:$0xff]  }
 0x112   :  { %v3941_v44 = vld [vmem:[%s5411_s3 + $0x1c8] ss:$16 sps:$4 sm:$0xff]  }
 0x113   :  { %2574 = vmatpush2.bf16.msra.mxu0 %v3896_v37  ;;  %v3931_v37 = vld [vmem:[%s5411_s3 + $0xc] ss:$16 sps:$4 sm:$0xff]  }
 0x114   :  { %2575 = vmatprep.subr.bf16.mxu0 %v3901_v39  ;;  %2613 = vmatpush2.bf16.msra.mxu1 %v3989_v46  ;;  %v3929_v39 = vld [vmem:[%s5411_s3 + $0x8] ss:$16 sps:$4 sm:$0xff]  }
 0x115   :  { %2614 = vmatprep.subr.bf16.mxu1 %v3994_v49  ;;  %v3947_v46 = vld [vmem:[%s5411_s3 + $0x1a8] ss:$16 sps:$4 sm:$0xff]  }
 0x116   :  { %v3953_v49 = vld [vmem:[%s5411_s3 + $0x188] ss:$16 sps:$4 sm:$0xff]  }
 0x117   :  { %2576 = vmatpush2.bf16.msra.mxu0 %v3899_v41  ;;  %v3937_v41 = vld [vmem:[%s5411_s3 + $0x1ec] ss:$16 sps:$4 sm:$0xff]  }
 0x118   :  { %2577 = vmatprep.subr.bf16.mxu0 %v3904_v43  ;;  %2615 = vmatpush2.bf16.msra.mxu1 %v3992_v52  ;;  %v3943_v43 = vld [vmem:[%s5411_s3 + $0x1cc] ss:$16 sps:$4 sm:$0xff]   ;;  %v3959_v52 = vld [vmem:[%s5411_s3 + $0x168] ss:$16 sps:$4 sm:$0xff]  }
 0x119   :  { %2616 = vmatprep.subr.bf16.mxu1 %v3997_v54  ;;  %v3965_v54 = vld [vmem:[%s5411_s3 + $0x148] ss:$16 sps:$4 sm:$0xff]  }
 0x11b   :  { %2578 = vmatpush2.bf16.msra.mxu0 %v3902_v45  ;;  %v3949_v45 = vld [vmem:[%s5411_s3 + $0x1ac] ss:$16 sps:$4 sm:$0xff]  }
 0x11c   :  { %2579 = vmatprep.subr.bf16.mxu0 %v3907_v48  ;;  %2617 = vmatpush2.bf16.msra.mxu1 %v3995_v55  ;;  %v3955_v48 = vld [vmem:[%s5411_s3 + $0x18c] ss:$16 sps:$4 sm:$0xff]  }
 0x11d   :  { %2618 = vmatprep.subr.bf16.mxu1 %v4000_v47  ;;  %v3973_v55 = vld [vmem:[%s5411_s3 + $0x12c] ss:$16 sps:$4 sm:$0xff]  }
 0x11f   :  { %2580 = vmatpush2.bf16.msra.mxu0 %v3905_v50  ;;  %v3961_v50 = vld [vmem:[%s5411_s3 + $0x16c] ss:$16 sps:$4 sm:$0xff]  }
 0x120   :  { %2631 = vmatprep.subr.bf16.mxu0 %v3910_v53  ;;  %2619 = vmatpush2.bf16.msra.mxu1 %v3998_v57  ;;  %v3967_v53 = vld [vmem:[%s5411_s3 + $0x14c] ss:$16 sps:$4 sm:$0xff]  }
 0x121   :  { %2620 = vmatprep.subr.bf16.mxu1 %v4003_v59  ;;  %v3979_v57 = vld [vmem:[%s5411_s3 + $0x10c] ss:$16 sps:$4 sm:$0xff]  }
 0x123   :  { %v1580_v15 = vpop.f32.mrf.mxu1 }
 0x124   :  { %2621 = vmatpush2.bf16.msra.mxu1 %v4001_v60  ;;  %v268_v60 = vsub.s32 2, %v5074_v62 }
 0x125   :  { %v1582_v56 = vpop.f32.mrf.mxu1  ;;  %2672 = vmatprep.subr.bf16.mxu1 %v4006_v35  ;;  %v272_v35 = vsub.s32 3, %v5074_v62 }
 0x126   :  { %v269_v61 = vrot.slane %v5080_v0, %v268_v60 }
 0x127   :  { %v1584_v58 = vpop.f32.mrf.mxu1  ;;  %v273_v2 = vrot.slane %v5080_v0, %v272_v35  ;;  %v4004_v0 = vld [vmem:[%s5411_s3 + $0x2e8] ss:$16 sps:$4 sm:$0xff]  }
 0x129   :  { %v1585_v6 = vpop.f32.mrf.mxu1 }
 0x12a   :  { %v3977_v6 = vld [vmem:[%s5411_s3 + $0x108] ss:$16 sps:$4 sm:$0xff]  }
 0x142   :  { %v1539_v9 = vpop.f32.mrf.mxu0 }
 0x143   :  { %v1540_v11 = vadd.f32 %v1539_v9, %v1499_v8 }
 0x144   :  { %v1541_v12 = vpop.f32.mrf.mxu0 }
 0x145   :  { %v1581_v13 = vadd.f32 %v1580_v15, %v1540_v11  ;;  %v1542_v14 = vadd.f32 %v1541_v12, %v1501_v10 }
 0x146   :  { %v1543_v17 = vpop.f32.mrf.mxu0 }
 0x147   :  { %v1583_v20 = vadd.f32 %v1582_v56, %v1542_v14  ;;  %v1751_v23 = vmax.f32 %v1581_v13, 0.0  ;;  %v3971_v56 = vld [vmem:[%s5411_s3 + $0x128] ss:$16 sps:$4 sm:$0xff]  }
 0x148   :  { %v1544_v24 = vpop.f32.mrf.mxu0 }
 0x149   :  { %v1752_v25 = vmax.f32 %v1583_v20, 0.0  ;;  %v5096_v21 = vpack.c.bf16 %v1751_v23, %v1751_v23 }
 0x14b   :  { %v1756_v26 = vpack.c.bf16 %v1752_v25, %v1752_v25 }
 0x14d   :  { %2581 = vmatprep.mubr.bf16.mxu0 %v1756_v26 }
 0x14e   :  { %2582 = vmatmul.mubr.bf16.vlgmr.msra.gmra.mxu0 %v5096_v21 }
 0x14f   :  { %2632 = vmatpush1.bf16.msra.mxu0 %v3908_v18  ;;  %2663 = vmatprep.mubr.bf16.mxu0 %v1756_v26 }
 0x150   :  { %2633 = vmatprep.subr.bf16.mxu0 %v3913_v19 }
 0x153   :  { %2634 = vmatpush1.bf16.msra.mxu0 %v3911_v22 }
 0x154   :  { %2635 = vmatprep.subr.bf16.mxu0 %v3916_v27  ;;  %v4009_v27 = vld [vmem:[%s5411_s3 + $0x2cc] ss:$16 sps:$4 sm:$0xff]  }
 0x157   :  { %2636 = vmatpush1.bf16.msra.mxu0 %v3914_v51  ;;  %v4007_v51 = vld [vmem:[%s5411_s3 + $0x2c8] ss:$16 sps:$4 sm:$0xff]  }
 0x158   :  { %2637 = vmatprep.subr.bf16.mxu0 %v3919_v7  ;;  %v4012_v7 = vld [vmem:[%s5411_s3 + $0x2ac] ss:$16 sps:$4 sm:$0xff]  }
 0x15b   :  { %2638 = vmatpush1.bf16.msra.mxu0 %v3917_v28  ;;  %v4010_v28 = vld [vmem:[%s5411_s3 + $0x2a8] ss:$16 sps:$4 sm:$0xff]  }
 0x15c   :  { %2639 = vmatprep.subr.bf16.mxu0 %v3922_v29  ;;  %v4015_v29 = vld [vmem:[%s5411_s3 + $0x28c] ss:$16 sps:$4 sm:$0xff]  }
 0x15f   :  { %2640 = vmatpush1.bf16.msra.mxu0 %v3920_v30  ;;  %v4013_v30 = vld [vmem:[%s5411_s3 + $0x288] ss:$16 sps:$4 sm:$0xff]  }
 0x160   :  { %2641 = vmatprep.subr.bf16.mxu0 %v3925_v16  ;;  %v4018_v16 = vld [vmem:[%s5411_s3 + $0x26c] ss:$16 sps:$4 sm:$0xff]  }
 0x163   :  { %v1621_v33 = vpop.f32.mrf.mxu1  ;;  %2642 = vmatpush1.bf16.msra.mxu0 %v3923_v31  ;;  %v4016_v31 = vld [vmem:[%s5411_s3 + $0x268] ss:$16 sps:$4 sm:$0xff]  }
 0x164   :  { %2643 = vmatprep.subr.bf16.mxu0 %v3928_v32  ;;  %v1622_v3 = vadd.f32 %v1621_v33, %v269_v61  ;;  %v4021_v32 = vld [vmem:[%s5411_s3 + $0x24c] ss:$16 sps:$4 sm:$0xff]   ;;  %v4019_v33 = vld [vmem:[%s5411_s3 + $0x248] ss:$16 sps:$4 sm:$0xff]  }
 0x165   :  { %v1623_v36 = vpop.f32.mrf.mxu1  ;;  %v4046_v61 = vld [vmem:[%s5411_s3 + $0x328] ss:$16 sps:$4 sm:$0xff]  }
 0x166   :  { %v1624_v4 = vadd.f32 %v1623_v36, %v273_v2  ;;  %v4022_v36 = vld [vmem:[%s5411_s3 + $0x228] ss:$16 sps:$4 sm:$0xff]  }
 0x167   :  { %v1625_v38 = vpop.f32.mrf.mxu1  ;;  %2644 = vmatpush1.bf16.msra.mxu0 %v3926_v34  ;;  %v4024_v34 = vld [vmem:[%s5411_s3 + $0x22c] ss:$16 sps:$4 sm:$0xff]  }
 0x168   :  { %2645 = vmatprep.subr.bf16.mxu0 %v3931_v37  ;;  %v4027_v37 = vld [vmem:[%s5411_s3 + $0x20c] ss:$16 sps:$4 sm:$0xff]   ;;  %v4025_v38 = vld [vmem:[%s5411_s3 + $0x208] ss:$16 sps:$4 sm:$0xff]  }
 0x169   :  { %v1626_v40 = vpop.f32.mrf.mxu1  ;;  %v4061_v2 = vld [vmem:[%s5413_s5 + $0x18] sm:$0xff]  }
 0x16a   :  { %v4028_v40 = vld [vmem:[%s5411_s3 + $0x3e8] ss:$16 sps:$4 sm:$0xff]  }
 0x16b   :  { %2646 = vmatpush1.bf16.msra.mxu0 %v3929_v39  ;;  %v4030_v39 = vld [vmem:[%s5411_s3 + $0x3ec] ss:$16 sps:$4 sm:$0xff]  }
 0x16c   :  { %2647 = vmatprep.subr.bf16.mxu0 %v3937_v41  ;;  %v4033_v41 = vld [vmem:[%s5411_s3 + $0x3cc] ss:$16 sps:$4 sm:$0xff]  }
 0x16f   :  { %2648 = vmatpush2.bf16.msra.mxu0 %v3935_v42  ;;  %v4031_v42 = vld [vmem:[%s5411_s3 + $0x3c8] ss:$16 sps:$4 sm:$0xff]  }
 0x170   :  { %2649 = vmatprep.subr.bf16.mxu0 %v3943_v43  ;;  %v4036_v43 = vld [vmem:[%s5411_s3 + $0x3ac] ss:$16 sps:$4 sm:$0xff]  }
 0x173   :  { %2650 = vmatpush2.bf16.msra.mxu0 %v3941_v44  ;;  %v4034_v44 = vld [vmem:[%s5411_s3 + $0x3a8] ss:$16 sps:$4 sm:$0xff]  }
 0x174   :  { %2651 = vmatprep.subr.bf16.mxu0 %v3949_v45  ;;  %v4039_v45 = vld [vmem:[%s5411_s3 + $0x38c] ss:$16 sps:$4 sm:$0xff]  }
 0x177   :  { %2652 = vmatpush2.bf16.msra.mxu0 %v3947_v46  ;;  %v4052_v46 = vld [vmem:[%s5413_s5 + $0x78] sm:$0xff]  }
 0x178   :  { %2653 = vmatprep.subr.bf16.mxu0 %v3955_v48  ;;  %v4053_v48 = vld [vmem:[%s5413_s5 + $0x38] sm:$0xff]  }
 0x17b   :  { %2654 = vmatpush2.bf16.msra.mxu0 %v3953_v49  ;;  %v4054_v49 = vld [vmem:[%s5413_s5 + $0x70] sm:$0xff]  }
 0x17c   :  { %2655 = vmatprep.subr.bf16.mxu0 %v3961_v50  ;;  %v4037_v50 = vld [vmem:[%s5411_s3 + $0x388] ss:$16 sps:$4 sm:$0xff]  }
 0x17f   :  { %2656 = vmatpush2.bf16.msra.mxu0 %v3959_v52  ;;  %v4055_v52 = vld [vmem:[%s5413_s5 + $0x30] sm:$0xff]  }
 0x180   :  { %2657 = vmatprep.subr.bf16.mxu0 %v3967_v53  ;;  %v4042_v53 = vld [vmem:[%s5411_s3 + $0x36c] ss:$16 sps:$4 sm:$0xff]  }
 0x182   :  { %v1662_v15 = vpop.f32.mrf.mxu0 }
 0x183   :  { %2658 = vmatpush2.bf16.msra.mxu0 %v3965_v54  ;;  %v1663_v5 = vadd.f32 %v1662_v15, %v1622_v3  ;;  %v4056_v54 = vld [vmem:[%s5413_s5 + $0x68] sm:$0xff]  }
 0x184   :  { %v1664_v47 = vpop.f32.mrf.mxu0  ;;  %2659 = vmatprep.subr.bf16.mxu0 %v3973_v55  ;;  %v4040_v55 = vld [vmem:[%s5411_s3 + $0x368] ss:$16 sps:$4 sm:$0xff]   ;;  %v4051_v3 = vld [vmem:[%s5411_s3 + $0x30c] ss:$16 sps:$4 sm:$0xff]  }
 0x185   :  { %v1665_v10 = vadd.f32 %v1664_v47, %v1624_v4  ;;  %v4057_v15 = vld [vmem:[%s5413_s5 + $0x28] sm:$0xff]   ;;  %v4058_v47 = vld [vmem:[%s5413_s5 + $0x60] sm:$0xff]   ;;  %v4062_v4 = vld [vmem:[%s5413_s5 + $0x50] sm:$0xff]  }
 0x186   :  { %v1666_v58 = vpop.f32.mrf.mxu0 }
 0x187   :  { %2660 = vmatpush2.bf16.msra.mxu0 %v3971_v56  ;;  %v4045_v56 = vld [vmem:[%s5411_s3 + $0x34c] ss:$16 sps:$4 sm:$0xff]   ;;  %v4059_v58 = vld [vmem:[%s5413_s5 + $0x20] sm:$0xff]  }
 0x188   :  { %v1667_v59 = vpop.f32.mrf.mxu0  ;;  %2661 = vmatprep.subr.bf16.mxu0 %v3979_v57  ;;  %v4043_v57 = vld [vmem:[%s5411_s3 + $0x348] ss:$16 sps:$4 sm:$0xff]  }
 0x189   :  { %v4060_v59 = vld [vmem:[%s5413_s5 + $0x58] sm:$0xff]  }
 0x18b   :  { %2662 = vmatpush2.bf16.msra.mxu0 %v3977_v6  ;;  %v4048_v6 = vld [vmem:[%s5411_s3 + $0x32c] ss:$16 sps:$4 sm:$0xff]  }
 0x18c   :  { %3471 = vmatprep.subr.bf16.mxu0 %v4052_v46 }
 0x18e   :  { %2664 = vmatmul.mubr.bf16.vlgmr.msra.gmra.mxu0 %v5096_v21 }
 0x18f   :  { %3472 = vmatpush3.bf16.msra.mxu0 %v4053_v48 }
 0x190   :  { %3473 = vmatprep.subr.bf16.mxu0 %v4054_v49 }
 0x193   :  { %3474 = vmatpush3.bf16.msra.mxu0 %v4055_v52 }
 0x194   :  { %3475 = vmatprep.subr.bf16.mxu0 %v4056_v54 }
 0x197   :  { %3476 = vmatpush3.bf16.msra.mxu0 %v4057_v15 }
 0x198   :  { %3477 = vmatprep.subr.bf16.mxu0 %v4058_v47 }
 0x19b   :  { %3478 = vmatpush3.bf16.msra.mxu0 %v4059_v58 }
 0x19c   :  { %3479 = vmatprep.subr.bf16.mxu0 %v4060_v59 }
 0x19f   :  { %3480 = vmatpush3.bf16.msra.mxu0 %v4061_v2 }
 0x1a0   :  { %3481 = vmatprep.subr.bf16.mxu0 %v4062_v4 }
 0x1a2   :  { %v1744_v9 = vpop.f32.mrf.mxu0 }
 0x1a3   :  { %v1703_v8 = vpop.f32.mrf.mxu1 }
 0x1a4   :  { %v1704_v11 = vadd.f32 %v1703_v8, %v1663_v5  ;;  %v1746_v13 = vpop.f32.mrf.mxu0  ;;  %v4049_v5 = vld [vmem:[%s5411_s3 + $0x308] ss:$16 sps:$4 sm:$0xff]   ;;  %v4063_v8 = vld [vmem:[%s5413_s5 + $0x10] sm:$0xff]  }
 0x1a5   :  { %v1705_v12 = vpop.f32.mrf.mxu1  ;;  %3482 = vmatpush3.bf16.msra.mxu0 %v4063_v8 }
 0x1a6   :  { %v1745_v14 = vadd.f32 %v1744_v9, %v1704_v11  ;;  %v1706_v17 = vadd.f32 %v1705_v12, %v1665_v10  ;;  %v1748_v23 = vpop.f32.mrf.mxu0  ;;  %v4064_v9 = vld [vmem:[%s5413_s5 + $0x48] sm:$0xff]   ;;  %v4066_v11 = vld [vmem:[%s5413_s5 + $0x40] sm:$0xff]  }
 0x1a7   :  { %v1707_v20 = vpop.f32.mrf.mxu1  ;;  %v4065_v10 = vld [vmem:[%s5413_s5 + $0x8] sm:$0xff]   ;;  %3483 = vmatprep.subr.bf16.mxu0 %v4064_v9  ;;  %v4067_v12 = vld [vmem:[%s5413_s5] sm:$0xff]  }
 0x1a8   :  { %v1747_v24 = vadd.f32 %v1746_v13, %v1706_v17  ;;  %v1753_v25 = vmax.f32 %v1745_v14, 0.0  ;;  %v1749_v18 = vpop.f32.mrf.mxu0  ;;  %v4068_v13 = vld [vmem:[%s5413_s5 + $0xf8] sm:$0xff]   ;;  %v4070_v17 = vld [vmem:[%s5413_s5 + $0xf0] sm:$0xff]   ;;  %v4072_v23 = vld [vmem:[%s5413_s5 + $0xe8] sm:$0xff]  }
 0x1a9   :  { %v1708_v26 = vpop.f32.mrf.mxu1  ;;  %3484 = vmatpush3.bf16.msra.mxu0 %v4065_v10  ;;  %v4069_v14 = vld [vmem:[%s5413_s5 + $0xb8] sm:$0xff]   ;;  %v4071_v20 = vld [vmem:[%s5413_s5 + $0xb0] sm:$0xff]  }
 0x1aa   :  { %v1754_v21 = vmax.f32 %v1747_v24, 0.0  ;;  %v5201_v22 = vpack.c.bf16 %v1753_v25, %v1753_v25  ;;  %3485 = vmatprep.subr.bf16.mxu0 %v4066_v11  ;;  %v4073_v24 = vld [vmem:[%s5413_s5 + $0xa8] sm:$0xff]   ;;  %v4074_v25 = vld [vmem:[%s5413_s5 + $0xe0] sm:$0xff]   ;;  %v4076_v18 = vld [vmem:[%s5413_s5 + $0xd8] sm:$0xff]  }
 0x1ab   :  { %v4075_v26 = vld [vmem:[%s5413_s5 + $0xa0] sm:$0xff]  }
 0x1ac   :  { %v1758_v19 = vpack.c.bf16 %v1754_v21, %v1754_v21  ;;  %v4077_v21 = vld [vmem:[%s5413_s5 + $0x98] sm:$0xff]  }
 0x1ad   :  { %3486 = vmatpush3.bf16.msra.mxu0 %v4067_v12 }
 0x1ae   :  { %2622 = vmatprep.mubr.bf16.mxu1 %v1758_v19 }
 0x1af   :  { %2623 = vmatmul.mubr.bf16.vlgmr.msra.gmra.mxu1 %v5201_v22 }
 0x1b0   :  { %2673 = vmatpush1.bf16.msra.mxu1 %v4004_v0  ;;  %2704 = vmatprep.mubr.bf16.mxu1 %v1758_v19  ;;  %v4078_v19 = vld [vmem:[%s5413_s5 + $0xd0] sm:$0xff]  }
 0x1b1   :  { %2674 = vmatprep.subr.bf16.mxu1 %v4009_v27  ;;  %v4079_v0 = vld [vmem:[%s5413_s5 + $0x90] sm:$0xff]  }
 0x1b4   :  { %2675 = vmatpush1.bf16.msra.mxu1 %v4007_v51 }
 0x1b5   :  { %2676 = vmatprep.subr.bf16.mxu1 %v4012_v7 }
 0x1b8   :  { %2677 = vmatpush1.bf16.msra.mxu1 %v4010_v28  ;;  %v4080_v28 = vld [vmem:[%s5413_s5 + $0xc8] sm:$0xff]  }
 0x1b9   :  { %2678 = vmatprep.subr.bf16.mxu1 %v4015_v29  ;;  %v4081_v29 = vld [vmem:[%s5413_s5 + $0x88] sm:$0xff]  }
 0x1bc   :  { %2679 = vmatpush1.bf16.msra.mxu1 %v4013_v30  ;;  %v4082_v30 = vld [vmem:[%s5413_s5 + $0xc0] sm:$0xff]  }
 0x1bd   :  { %2680 = vmatprep.subr.bf16.mxu1 %v4018_v16  ;;  %v4083_v16 = vld [vmem:[%s5413_s5 + $0x80] sm:$0xff]  }
 0x1c0   :  { %2681 = vmatpush1.bf16.msra.mxu1 %v4016_v31 }
 0x1c1   :  { %2682 = vmatprep.subr.bf16.mxu1 %v4021_v32 }
 0x1c4   :  { %2683 = vmatpush1.bf16.msra.mxu1 %v4019_v33 }
 0x1c5   :  { %2684 = vmatprep.subr.bf16.mxu1 %v4024_v34 }
 0x1c8   :  { %2685 = vmatpush1.bf16.msra.mxu1 %v4022_v36  ;;  %v1887_v36 = vld [vmem:[%s5412_s4] sm:$0xf] }
 0x1c9   :  { %2686 = vmatprep.subr.bf16.mxu1 %v4027_v37  ;;  %v1892_v37 = vrot.slane %v1887_v36, %v260_v63  ;;  %v1900_v63 = vrot.slane %v1887_v36, %v268_v60 }
 0x1cc   :  { %2687 = vmatpush1.bf16.msra.mxu1 %v4025_v38  ;;  %v1896_v38 = vrot.slane %v1887_v36, %v264_v1  ;;  %v1904_v1 = vrot.slane %v1887_v36, %v272_v35  ;;  %v3438_v35 = vld [vmem:[%s5414_s6] ss:$0 sm:$0xff] }
 0x1cd   :  { %2688 = vmatprep.subr.bf16.mxu1 %v4030_v39 }
 0x1d0   :  { %2689 = vmatpush2.bf16.msra.mxu1 %v4028_v40 }
 0x1d1   :  { %2690 = vmatprep.subr.bf16.mxu1 %v4033_v41 }
 0x1d4   :  { %2691 = vmatpush2.bf16.msra.mxu1 %v4031_v42 }
 0x1d5   :  { %2692 = vmatprep.subr.bf16.mxu1 %v4036_v43 }
 0x1d8   :  { %2693 = vmatpush2.bf16.msra.mxu1 %v4034_v44 }
 0x1d9   :  { %2694 = vmatprep.subr.bf16.mxu1 %v4039_v45 }
 0x1dc   :  { %2695 = vmatpush2.bf16.msra.mxu1 %v4037_v50 }
 0x1dd   :  { %2696 = vmatprep.subr.bf16.mxu1 %v4042_v53 }
 0x1e0   :  { %2697 = vmatpush2.bf16.msra.mxu1 %v4040_v55 }
 0x1e1   :  { %2698 = vmatprep.subr.bf16.mxu1 %v4045_v56 }
 0x1e4   :  { %2699 = vmatpush2.bf16.msra.mxu1 %v4043_v57 }
 0x1e5   :  { %2700 = vmatprep.subr.bf16.mxu1 %v4048_v6 }
 0x1e8   :  { %2701 = vmatpush2.bf16.msra.mxu1 %v4046_v61 }
 0x1e9   :  { %2702 = vmatprep.subr.bf16.mxu1 %v4051_v3 }
 0x1ec   :  { %2703 = vmatpush2.bf16.msra.mxu1 %v4049_v5 }
 0x1ed   :  { %3493 = vmatprep.subr.bf16.mxu1 %v4068_v13 }
 0x1ef   :  { %2705 = vmatmul.mubr.bf16.vlgmr.msra.gmra.mxu1 %v5201_v22 }
 0x1f0   :  { %3494 = vmatpush3.bf16.msra.mxu1 %v4069_v14 }
 0x1f1   :  { %3495 = vmatprep.subr.bf16.mxu1 %v4070_v17 }
 0x1f4   :  { %3496 = vmatpush3.bf16.msra.mxu1 %v4071_v20 }
 0x1f5   :  { %3497 = vmatprep.subr.bf16.mxu1 %v4072_v23 }
 0x1f8   :  { %3498 = vmatpush3.bf16.msra.mxu1 %v4073_v24 }
 0x1f9   :  { %3499 = vmatprep.subr.bf16.mxu1 %v4074_v25 }
 0x1fc   :  { %3500 = vmatpush3.bf16.msra.mxu1 %v4075_v26 }
 0x1fd   :  { %3501 = vmatprep.subr.bf16.mxu1 %v4076_v18 }
 0x200   :  { %3502 = vmatpush3.bf16.msra.mxu1 %v4077_v21 }
 0x201   :  { %3503 = vmatprep.subr.bf16.mxu1 %v4078_v19 }
 0x204   :  { %3504 = vmatpush3.bf16.msra.mxu1 %v4079_v0 }
 0x205   :  { %3505 = vmatprep.subr.bf16.mxu1 %v4080_v28 }
 0x208   :  { %3506 = vmatpush3.bf16.msra.mxu1 %v4081_v29 }
 0x209   :  { %3507 = vmatprep.subr.bf16.mxu1 %v4082_v30 }
 0x20c   :  { %3508 = vmatpush3.bf16.msra.mxu1 %v4083_v16 }
 0x20e   :  { %v2583_v22 = vpop.f32.mrf.mxu0 }
 0x20f   :  { %v2584_v39 = vadd.f32 %v2583_v22, %v1892_v37 }
 0x210   :  { %v2585_v27 = vpop.f32.mrf.mxu0 }
 0x211   :  { %v2586_v41 = vadd.f32 %v2585_v27, %v1896_v38 }
 0x212   :  { %v2587_v51 = vpop.f32.mrf.mxu0 }
 0x214   :  { %v2588_v7 = vpop.f32.mrf.mxu0 }
 0x24e   :  { %v2665_v31 = vpop.f32.mrf.mxu0 }
 0x24f   :  { %v2666_v53 = vadd.f32 %v2665_v31, %v1900_v63 }
 0x250   :  { %v2667_v32 = vpop.f32.mrf.mxu0 }
 0x251   :  { %v2668_v55 = vadd.f32 %v2667_v32, %v1904_v1 }
 0x252   :  { %v2669_v33 = vpop.f32.mrf.mxu0 }
 0x254   :  { %v2670_v34 = vpop.f32.mrf.mxu0 }
 0x26f   :  { %v2624_v40 = vpop.f32.mrf.mxu1 }
 0x270   :  { %v2625_v42 = vadd.f32 %v2624_v40, %v2584_v39 }
 0x271   :  { %v2626_v43 = vpop.f32.mrf.mxu1 }
 0x272   :  { %v2627_v44 = vadd.f32 %v2626_v43, %v2586_v41  ;;  %v2713_v45 = vmax.f32 %v2625_v42, 0.0 }
 0x273   :  { %v2628_v46 = vpop.f32.mrf.mxu1 }
 0x274   :  { %v2714_v48 = vmax.f32 %v2627_v44, 0.0  ;;  %v2717_v52 = vpack.c.bf16 %v2713_v45, %v2713_v45 }
 0x275   :  { %v2629_v49 = vpop.f32.mrf.mxu1 }
 0x276   :  { %v2718_v50 = vpack.c.bf16 %v2714_v48, %v2714_v48 }
 0x278   :  { %3016 = vmatprep.mubr.bf16.mxu0 %v2718_v50 }
 0x279   :  { %3017 = vmatmul.mubr.bf16.vlgmr.msra.gmra.mxu0 %v2717_v52 }
 0x2af   :  { %v2706_v54 = vpop.f32.mrf.mxu1 }
 0x2b0   :  { %v2707_v15 = vadd.f32 %v2706_v54, %v2666_v53 }
 0x2b1   :  { %v2708_v56 = vpop.f32.mrf.mxu1 }
 0x2b2   :  { %v2709_v47 = vadd.f32 %v2708_v56, %v2668_v55  ;;  %v2715_v57 = vmax.f32 %v2707_v15, 0.0 }
 0x2b3   :  { %v2710_v58 = vpop.f32.mrf.mxu1 }
 0x2b4   :  { %v2716_v6 = vmax.f32 %v2709_v47, 0.0  ;;  %v2719_v2 = vpack.c.bf16 %v2715_v57, %v2715_v57 }
 0x2b5   :  { %v2711_v59 = vpop.f32.mrf.mxu1 }
 0x2b6   :  { %v2720_v61 = vpack.c.bf16 %v2716_v6, %v2716_v6 }
 0x2b8   :  { %3056 = vmatprep.mubr.bf16.mxu1 %v2720_v61 }
 0x2b9   :  { %3057 = vmatmul.mubr.bf16.vlgmr.msra.gmra.mxu1 %v2719_v2 }
 0x339   :  { %v3487_v3 = vpop.f32.mrf.mxu0 }
 0x33b   :  { %v3488_v4 = vpop.f32.mrf.mxu0 }
 0x33c   :  { %v3489_v62 = vadd.f32 %v3488_v4, %v3487_v3 }
 0x33d   :  { %v3490_v60 = vpop.f32.mrf.mxu0 }
 0x33e   :  { %v3019_v10 = vadd.f32 %v3489_v62, %v3438_v35 }
 0x33f   :  { %v3491_v5 = vpop.f32.mrf.mxu0 }
 0x379   :  { %v3509_v8 = vpop.f32.mrf.mxu1 }
 0x37b   :  { %v3510_v9 = vpop.f32.mrf.mxu1 }
 0x37c   :  { %v3511_v11 = vadd.f32 %v3510_v9, %v3509_v8 }
 0x37d   :  { %v3512_v12 = vpop.f32.mrf.mxu1 }
 0x37e   :  { %v3059_v13 = vadd.f32 %v3511_v11, %v3019_v10 }
 0x37f   :  { %v3513_v14 = vpop.f32.mrf.mxu1 }
 0x380   :  { %3064 = vst [vmem:[#allocation2] sm:$0xff] %v3059_v13 }
 0x381   :  { %4096 = shalt.err (!%p4093_p4)
}
 0x382   :  { %3074 = dma.vmem_to_hbm [thread:$0]  %s3072_s12, 128, %s5415_s7, [#allocation3]  }
 0x383   :  { %4105 = dma.done.wait [#allocation3], 128  }
 0x384   :  { %4106 = vsyncadd [#allocation3], 4294967168 }
 0x385   :  { %3078 = vsyncpa [#allocation3], 1 }

</bundles_post_ra>
